<compile_context>
chip_gen: v7x
topology: tpu7x:2x2x1
jax: 0.10.0
libtpu: 0.0.40
codegen_flags: <defaults>
</compile_context>

<pallas_src>
import numpy as np
import jax
import jax.numpy as jnp
from jax import lax
from jax.experimental import pallas as pl
from jax.experimental.pallas import tpu as pltpu

INPUT_SIZE = 1280   # default `input_size` of the module
HIDDEN = 8          # bottleneck width
GROUPS = 4


# ----------------------------- Pallas kernel ------------------------------ #
def adapter_kernel(x_ref, wdm_ref, wu_ref, bu_ref, o_ref):
    # In-kernel cast: x arrives in its native dtype (f32); casting here avoids a
    # separate XLA cast pass over HBM when the kernel is used standalone.
    x = x_ref[0].astype(wdm_ref.dtype)                     # (tile_s, C)

    # adapter_down_2 ∘ adapter_mid_2 folded into one block-diag matmul, computed
    # transposed: (H, C) contract C with (tile_s, C) -> (H, tile_s). Lane-dense
    # bottleneck intermediate (~H/8 vregs instead of a lane-sparse (tile_s, 8)).
    y_t = lax.dot_general(
        wdm_ref[...], x,
        dimension_numbers=(((1,), (1,)), ((), ())),
        preferred_element_type=jnp.float32)                # (H, tile_s), f32 accum

    # TODO(synk): nn.Dropout(0.1) is identity in eval mode; training-mode random mask not implemented.

    # adapter_up_2, still transposed: (H, C) contract H with (H, tile_s) -> (C, tile_s).
    u_t = lax.dot_general(
        wu_ref[...], y_t.astype(wu_ref.dtype),
        dimension_numbers=(((0,), (0,)), ((), ())),
        preferred_element_type=jnp.float32)                # (C, tile_s), f32 accum
    u_t = u_t + bu_ref[...]                                # (C, 1) column bias (bdm folded in)

    # Result is already in NCHW-flat orientation: direct lane-dense store, no transpose.
    o_ref[0] = u_t.astype(o_ref.dtype)


# --------------------------- host-side weight prep -------------------------- #
def _grouped_conv_to_dense(w):
    """Grouped 1x1 Conv2d weight (out_c, in_c//G, 1, 1) -> dense block-diagonal
    (in_c, out_c) so that y = x @ W reproduces the conv. Pure numpy (one-time)."""
    w = np.asarray(w, np.float32)
    out_c, in_pg = w.shape[0], w.shape[1]
    out_pg = out_c // GROUPS
    in_c = in_pg * GROUPS
    dense = np.zeros((in_c, out_c), np.float32)
    for g in range(GROUPS):
        dense[g * in_pg:(g + 1) * in_pg,
              g * out_pg:(g + 1) * out_pg] = w[g * out_pg:(g + 1) * out_pg, :, 0, 0].T
    return dense


def prepare_params(params, compute_dtype=jnp.bfloat16):
    """One-time host-side prep: build dense block-diag weights, fold mid into
    down and the bottleneck bias into the up bias (exact in eval mode since
    dropout is applied after mid), cast weights to bf16."""
    wd = _grouped_conv_to_dense(params["w_down"])          # (C, H)
    wm = _grouped_conv_to_dense(params["w_mid"])           # (H, H)
    wu = _grouped_conv_to_dense(params["w_up"])            # (H, C)
    bd = np.asarray(params["b_down"], np.float32)
    bm = np.asarray(params["b_mid"], np.float32)
    bu = np.asarray(params["b_up"], np.float32)

    wdm = wd @ wm                                          # (C, H)
    bdm = bd @ wm + bm                                     # (H,)
    bu_eff = bu + bdm @ wu                                 # (C,)  bottleneck bias folded
    C = wdm.shape[0]
    return {
        "wdm_t": jnp.asarray(wdm.T, compute_dtype),        # (H, C) lane-dense
        "wu": jnp.asarray(wu, compute_dtype),              # (H, C) lane-dense
        "bu_col": jnp.asarray(bu_eff.reshape(C, 1), jnp.float32),
    }


def _pick_tile(s, b, max_tile=512, min_total_steps=8):
    """Largest multiple of 128 dividing s (<= max_tile) that still yields at
    least `min_total_steps` grid steps (keeps each TensorCore's pipeline with
    >=2 overlapped steps on v7x); otherwise the smallest dividing candidate."""
    cands = [t for t in range(128, min(max_tile, s) + 1, 128) if s % t == 0]
    assert cands, "spatial size must be a multiple of 128 (pad first)"
    for t in sorted(cands, reverse=True):
        if b * (s // t) >= min_total_steps:
            return t
    return cands[0]


# --------------------------------- wrapper ---------------------------------- #
def bi_direct_adapter_2(x, prepped, *, max_tile=512, min_total_steps=8):
    """x: (B, D1, D2, C) channel-last input (the module permutes to NCHW
    internally). Returns the module output of shape (B, D1, D2, C)."""
    B, D1, D2, C = x.shape
    S = D1 * D2
    assert C % GROUPS == 0 and C % 128 == 0
    H = prepped["wdm_t"].shape[0]

    x3 = x.reshape(B, S, C)                       # native dtype; cast is in-kernel
    # Pad the spatial dim to a multiple of 128 so all stores stay lane-dense.
    S_pad = pl.cdiv(S, 128) * 128
    if S_pad != S:
        x3 = jnp.pad(x3, ((0, 0), (0, S_pad - S), (0, 0)))
    tile_s = _pick_tile(S_pad, B, max_tile, min_total_steps)

    out = pl.pallas_call(
        adapter_kernel,
        out_shape=jax.ShapeDtypeStruct((B, C, S_pad), x.dtype),
        grid_spec=pltpu.PrefetchScalarGridSpec(
            num_scalar_prefetch=0,
            grid=(B, S_pad // tile_s),
            in_specs=[
                pl.BlockSpec((1, tile_s, C), lambda b, s: (b, s, 0)),
                pl.BlockSpec((H, C), lambda b, s: (0, 0)),
                pl.BlockSpec((H, C), lambda b, s: (0, 0)),
                pl.BlockSpec((C, 1), lambda b, s: (0, 0)),
            ],
            out_specs=pl.BlockSpec((1, C, tile_s), lambda b, s: (b, 0, s)),
        ),
        compiler_params=pltpu.CompilerParams(
            dimension_semantics=("parallel", "parallel"),
            vmem_limit_bytes=32 * 1024 * 1024,    # safe on v7x's 64 MiB VMEM too
        ),
    )(x3, prepped["wdm_t"], prepped["wu"], prepped["bu_col"])

    if S_pad != S:
        out = out[:, :, :S]
    # `out` is the NCHW conv output flattened over spatial; PyTorch's
    # `.view(B, D1, D2, C)` is a raw reinterpretation of that buffer, so this
    # reshape involves no data movement.
    return out.reshape(B, D1, D2, C)


# ------------------------- pure-JAX reference ------------------------------ #
def reference(x, params):
    x_nchw = jnp.transpose(x, (0, 3, 1, 2))

    def gconv(inp, w, b):
        y = lax.conv_general_dilated(inp, w, (1, 1), "VALID",
                                     feature_group_count=GROUPS)
        return y + b[None, :, None, None]

    y = gconv(x_nchw, params["w_down"], params["b_down"])
    z = gconv(y, params["w_mid"], params["b_mid"])
    u = gconv(z, params["w_up"], params["b_up"])
    B, C, D1, D2 = u.shape
    return u.reshape(B, D1, D2, C)


# ---------------------------------- main ----------------------------------- #
if __name__ == "__main__":
    key = jax.random.PRNGKey(0)
    kx, k1, k2, k3, k4, k5, k6 = jax.random.split(key, 7)

    B, D1, D2, C = 2, 16, 16, INPUT_SIZE   # S = 256 tokens per batch
    x = jax.random.normal(kx, (B, D1, D2, C), jnp.float32)

    # NOTE: the original module zero-initializes every weight/bias (output would
    # be all zeros). Use small deterministic random values so the kernel math is
    # actually exercised; shapes match nn.Conv2d(..., groups=4) exactly.
    params = {
        "w_down": 0.02 * jax.random.normal(k1, (HIDDEN, C // GROUPS, 1, 1), jnp.float32),
        "b_down": 0.02 * jax.random.normal(k2, (HIDDEN,), jnp.float32),
        "w_mid":  0.02 * jax.random.normal(k3, (HIDDEN, HIDDEN // GROUPS, 1, 1), jnp.float32),
        "b_mid":  0.02 * jax.random.normal(k4, (HIDDEN,), jnp.float32),
        "w_up":   0.02 * jax.random.normal(k5, (C, HIDDEN // GROUPS, 1, 1), jnp.float32),
        "b_up":   0.02 * jax.random.normal(k6, (C,), jnp.float32),
    }

    prepped = prepare_params(params)
    out = bi_direct_adapter_2(x, prepped)
    out = jax.block_until_ready(out)

    ref = reference(x, params)
    assert out.shape == (B, D1, D2, C)
    # bf16 weights / in-kernel bf16 cast (f32 accumulation) vs a pure-f32 reference.
    max_err = float(jnp.max(jnp.abs(out - ref)))
    assert jnp.allclose(out, ref, rtol=2e-2, atol=2e-3), f"mismatch vs reference, max_err={max_err}"

    print("KERNEL_OK")
</pallas_src>

<mosaic_0001>
module attributes {stable_mosaic.version = 11 : i64} {
  func.func @adapter_kernel(%arg0: i32, %arg1: i32, %arg2: memref<1x128x1280xf32, #tpu.memory_space<vmem>>, %arg3: memref<8x1280xbf16, #tpu.memory_space<vmem>>, %arg4: memref<8x1280xbf16, #tpu.memory_space<vmem>>, %arg5: memref<1280x1xf32, #tpu.memory_space<vmem>>, %arg6: memref<1x1280x128xf32, #tpu.memory_space<vmem>>) attributes {dimension_semantics = [#tpu.dimension_semantics<parallel>, #tpu.dimension_semantics<parallel>], iteration_bounds = array<i64: 2, 2>, scalar_prefetch = 0 : i64, scratch_operands = 0 : i64, tpu.core_type = #tpu.core_type<tc>, window_params = [{transform_indices = @transform_0, window_bounds = array<i64: 1, 128, 1280>}, {pipeline_mode = #tpu.pipeline_mode<synchronous>, transform_indices = @transform_1, window_bounds = array<i64: 8, 1280>}, {pipeline_mode = #tpu.pipeline_mode<synchronous>, transform_indices = @transform_2, window_bounds = array<i64: 8, 1280>}, {pipeline_mode = #tpu.pipeline_mode<synchronous>, transform_indices = @transform_3, window_bounds = array<i64: 1280, 1>}, {transform_indices = @transform_4, window_bounds = array<i64: 1, 1280, 128>}]} {
    %c0 = arith.constant 0 : index
    %c0_0 = arith.constant 0 : index
    %c0_1 = arith.constant 0 : index
    %0 = vector.load %arg2[%c0, %c0_0, %c0_1] : memref<1x128x1280xf32, #tpu.memory_space<vmem>>, vector<1x128x1280xf32>
    %1 = vector.shape_cast %0 : vector<1x128x1280xf32> to vector<128x1280xf32>
    %2 = arith.truncf %1 : vector<128x1280xf32> to vector<128x1280xbf16>
    %c0_2 = arith.constant 0 : index
    %c0_3 = arith.constant 0 : index
    %3 = vector.load %arg3[%c0_2, %c0_3] : memref<8x1280xbf16, #tpu.memory_space<vmem>>, vector<8x1280xbf16>
    %cst = arith.constant dense<0.000000e+00> : vector<8x128xf32>
    %4 = tpu.matmul %3, %2, %cst {dimension_numbers = #tpu.dot_dimension_numbers<[1], [1], [0], [0], [0, 0, 1, 0], [], []>} : vector<8x1280xbf16>, vector<128x1280xbf16>, vector<8x128xf32> -> vector<8x128xf32>
    %c0_4 = arith.constant 0 : index
    %c0_5 = arith.constant 0 : index
    %5 = vector.load %arg4[%c0_4, %c0_5] : memref<8x1280xbf16, #tpu.memory_space<vmem>>, vector<8x1280xbf16>
    %6 = arith.truncf %4 : vector<8x128xf32> to vector<8x128xbf16>
    %cst_6 = arith.constant dense<0.000000e+00> : vector<1280x128xf32>
    %7 = tpu.matmul %5, %6, %cst_6 {dimension_numbers = #tpu.dot_dimension_numbers<[0], [0], [1], [1], [0, 1, 1, 1], [], []>} : vector<8x1280xbf16>, vector<8x128xbf16>, vector<1280x128xf32> -> vector<1280x128xf32>
    %c0_7 = arith.constant 0 : index
    %c0_8 = arith.constant 0 : index
    %8 = vector.load %arg5[%c0_7, %c0_8] : memref<1280x1xf32, #tpu.memory_space<vmem>>, vector<1280x1xf32>
    %9 = vector.broadcast %8 : vector<1280x1xf32> to vector<1280x128xf32>
    %10 = arith.addf %7, %9 : vector<1280x128xf32>
    %c0_9 = arith.constant 0 : index
    %c0_10 = arith.constant 0 : index
    %c0_11 = arith.constant 0 : index
    %11 = vector.load %arg6[%c0_9, %c0_10, %c0_11] : memref<1x1280x128xf32, #tpu.memory_space<vmem>>, vector<1x1280x128xf32>
    %12 = vector.shape_cast %11 : vector<1x1280x128xf32> to vector<1280x128xf32>
    %13 = vector.shape_cast %10 : vector<1280x128xf32> to vector<1x1280x128xf32>
    tpu.vector_store %arg6[%c0_9, %c0_10, %c0_11], %13 {strides = array<i32>} : memref<1x1280x128xf32, #tpu.memory_space<vmem>>, vector<1x1280x128xf32>,
    return
  }
  func.func @transform_0(%arg0: i32, %arg1: i32) -> (i32, i32, i32) {
    %c0_i32 = arith.constant 0 : i32
    %c0_i32_0 = arith.constant 0 : i32
    return %arg0, %arg1, %c0_i32 : i32, i32, i32
  }
  func.func @transform_1(%arg0: i32, %arg1: i32) -> (i32, i32) {
    %c0_i32 = arith.constant 0 : i32
    %c0_i32_0 = arith.constant 0 : i32
    %c0_i32_1 = arith.constant 0 : i32
    return %c0_i32, %c0_i32_0 : i32, i32
  }
  func.func @transform_2(%arg0: i32, %arg1: i32) -> (i32, i32) {
    %c0_i32 = arith.constant 0 : i32
    %c0_i32_0 = arith.constant 0 : i32
    %c0_i32_1 = arith.constant 0 : i32
    return %c0_i32, %c0_i32_0 : i32, i32
  }
  func.func @transform_3(%arg0: i32, %arg1: i32) -> (i32, i32) {
    %c0_i32 = arith.constant 0 : i32
    %c0_i32_0 = arith.constant 0 : i32
    %c0_i32_1 = arith.constant 0 : i32
    return %c0_i32, %c0_i32_0 : i32, i32
  }
  func.func @transform_4(%arg0: i32, %arg1: i32) -> (i32, i32, i32) {
    %c0_i32 = arith.constant 0 : i32
    %c0_i32_0 = arith.constant 0 : i32
    return %arg0, %c0_i32, %arg1 : i32, i32, i32
  }
}

</mosaic_0001>

<bundles_post_ra>
// kernel: tpu_custom_call.1
= control target key start
LH: loop header
LB: loop body
LE: loop exit
PB: predicated region body
PF: predicated region fallthrough
CT: control target
= control target key end

     0   :  { %s5663_s0 = inlined_call_operand.hbm [shape: f32[2,256,1280], index: 0, kind: input, shape index: {}]   ;;  %s5664_s1 = inlined_call_operand.hbm [shape: bf16[8,1280], index: 1, kind: input, shape index: {}]   ;;  %s5665_s2 = inlined_call_operand.hbm [shape: bf16[8,1280], index: 2, kind: input, shape index: {}]   ;;  %s5666_s3 = inlined_call_operand.vmem [shape: f32[1280,1], index: 3, kind: input, shape index: {}]   ;;  %s5667_s4 = inlined_call_operand.hbm [shape: f32[2,1280,256], index: 4, kind: output, shape index: {}]  }
   0x1   :  { %5677 = sst [smem:[#allocation101_spill]] %s5664_s1 }
   0x2   :  { %5678 = sst [smem:[#allocation102_spill]] %s5665_s2 }
   0x3   :  { %9 = vsyncpa [#allocation3], 0 }
   0x4   :  { %11 = vsyncpa [#allocation3 + $0x1], 0 }
   0x5   :  { %12 = vsyncpa [#allocation6], 0 }
   0x6   :  { %13 = vsyncpa [#allocation4], 0 }
   0x7   :  { %15 = vsyncpa [#allocation4 + $0x1], 0  ;;  %s3836_s15 = smov 0   ;;  %s3838_s16 = smov 0  }
   0x8   :  { %s3840_s17 = smov 0   ;;  %s3842_s18 = smov 0  }
   0x9   :  { %s3844_s19 = smov 0   ;;  %s3846_s20 = smov 0  }
   0xa   :  { %s3848_s21 = smov 0   ;;  %s3850_s22 = smov 0  }
   0xb LB: > { %5679 = sst [smem:[#allocation12_spill]] %s3791_s20  ;;  %s3104_s23 = sadd.s32 4294967295, %s3799_s22   ;;  %s3799_s22 = sphi %s3850_s22, %s21_s22   ;;  %s3795_s21 = sphi %s3848_s21, %s5878_s21   ;;  %s3791_s20 = sphi %s3846_s20, %s5873_s20   ;;  %s3787_s19 = sphi %s3844_s19, %s5877_s19   ;;  %s3783_s18 = sphi %s3842_s18, %s5872_s18   ;;  %s3779_s17 = sphi %s3840_s17, %s5876_s17   ;;  %s3775_s16 = sphi %s3838_s16, %s5875_s16   ;;  %s3771_s15 = sphi %s3836_s15, %s5874_s15  }
   0xc   : > { %s3105_s24 = sadd.s32 4294967294, %s3799_s22   ;;  %p49_p0 = scmp.ne.s32.totalorder %s3779_s17, %s3775_s16 }
   0xd   : > { %p50_p1 = scmp.eq.s32.totalorder %s3799_s22, 0  ;;  %p55_p2 = scmp.ne.s32.totalorder %s3775_s16, %s3771_s15 }
   0xe   : > { %p3884_p3 = scmp.eq.s32.totalorder %s3104_s23, 0  ;;  %p144_p4 = scmp.eq.s32.totalorder %s3104_s23, 3 }
   0xf   : > { %p3888_p5 = por %p50_p1, %p49_p0  ;;  %p150_p6 = scmp.eq.s32.totalorder %s3105_s24, 3 }
  0x10   : > { %s5680_s26 = scalar_select %p3884_p3, 1, 0 }
  0x11   : > { %p3894_p7 = por %p3884_p3, %p55_p2  ;;  %p3898_p8 = por %p144_p4, %p49_p0 }
  0x12   : > { %p3902_p9 = por %p150_p6, %p55_p2  ;;  %p3106_p10 = scmp.ge.s32.totalorder %s3799_s22, 1 }
  0x13   : > { %s5682_s28 = scalar_select %p3894_p7, 1, 0 }
  0x14   : > { %s5683_s29 = scalar_select %p3898_p8, 1, 0 }
  0x15   : > { %s5684_s30 = scalar_select %p3902_p9, 1, 0 }
  0x16   : > { %p157_p11 = scmp.lt.s32.totalorder %s3799_s22, 5  ;;  %s3801_s6 = smov [#allocation5]  }
  0x17   : > { %5685 = sst [smem:[#allocation13_spill]] %s5684_s30  ;;  %s170_s7 = sshll.u32 %s3801_s6, 4  ;;  %s171_s7 = int_to_ptr.vmem [resolvable:$true] %s170_s7 }
  0x18   : > { %p3908_p12 = pnand %p3106_p10, %p157_p11  ;;  %p3513_p13 = scmp.lt.s32.totalorder %s3799_s22, 4 }
  0x19   : > { %s3802_s9 = smov [#allocation7]   ;;  %s5689_s1 = sld [smem:[#allocation101_spill]] }
  0x1a   : > { %s5686_s5 = scalar_select %p3908_p12, 1, 0 }
  0x1b   : > { %p3496_p0 = pneg %p3908_p12  ;;  %p3917_p1 = pnand %p3513_p13, %p3888_p5 }
  0x1c   : > { %s181_s10 = sshll.u32 %s3802_s9, 4  ;;  %s3927_s10 = int_to_ptr.vmem [resolvable:$true] %s181_s10 }
  0x1d   : > { %s5687_s8 = scalar_select %p3917_p1, 1, 0 }
  0x1e   : > { %p3923_p2 = pnand %p3496_p0, %p3884_p3 }
  0x1f   : > { %s3611_s14 = scalar_lea.hbm %s5689_s1, 640 }
  0x20   : > { %p3612_p4 = scmp.ne.s32.totalorder %s5689_s1, %s3611_s14  ;;  %p3613_p5 = pneg %p3923_p2 }
  0x21   : > { %p3618_p11 = scmp.lt.u32.totalorder %s3611_s14, %s5689_s1 }
  0x22   : > { %p3614_p6 = pnand %p3613_p5, %p3612_p4 }
  0x24   : > { %p3615_p10 = pneg %p3614_p6 }
  0x26   : > { %p3620_p13 = pnand %p3618_p11, %p3615_p10 }
  0x28   : > { %3623 = shalt.err (!%p3620_p13)
}
  0x29   : > { %s3624_s9 = scalar_lea.vmem %s171_s7, 640  ;;  %p3632_p3 = scmp.lt.s32.totalorder %s171_s7, %s171_s7 }
  0x2a   : > { %p3625_p0 = scmp.ne.s32.totalorder %s171_s7, %s3624_s9  ;;  %p3633_p7 = scmp.lt.s32.totalorder %s3624_s9, %s3624_s9 }
  0x2c   : > { %p3627_p9 = pnand %p3625_p0, %p3613_p5  ;;  %p3634_p12 = por %p3633_p7, %p3632_p3 }
  0x2e   : > { %p3628_p8 = pneg %p3627_p9 }
  0x30   : > { %p3635_p1 = pnand %p3634_p12, %p3628_p8 }
  0x32   : > { %3638 = shalt.err (!%p3635_p1)
}
  0x33   : > { %3499 = dma.hbm_to_vmem [thread:$0]  (!%p3923_p2), %s5689_s1, 640, %s171_s7, [#allocation6]  }
  0x34   : > { %s5690_s2 = sld [smem:[#allocation102_spill]] }
  0x3a   : > { %s3639_s24 = scalar_lea.hbm %s5690_s2, 640 }
  0x3b   : > { %p3640_p9 = scmp.ne.s32.totalorder %s5690_s2, %s3639_s24  ;;  %p3646_p8 = scmp.lt.u32.totalorder %s3639_s24, %s5690_s2 }
  0x3d   : > { %p3642_p3 = pnand %p3640_p9, %p3613_p5 }
  0x3f   : > { %p3643_p7 = pneg %p3642_p3 }
  0x41   : > { %p3648_p12 = pnand %p3646_p8, %p3643_p7 }
  0x43   : > { %3651 = shalt.err (!%p3648_p12)
}
  0x44   : > { %s3652_s7 = scalar_lea.vmem %s3927_s10, 640  ;;  %p3660_p10 = scmp.lt.s32.totalorder %s3927_s10, %s3927_s10 }
  0x45   : > { %p3653_p1 = scmp.ne.s32.totalorder %s3927_s10, %s3652_s7  ;;  %p3661_p11 = scmp.lt.s32.totalorder %s3652_s7, %s3652_s7 }
  0x47   : > { %p3655_p4 = pnand %p3653_p1, %p3613_p5  ;;  %p3662_p13 = por %p3661_p11, %p3660_p10 }
  0x49   : > { %p3656_p6 = pneg %p3655_p4 }
  0x4b   : > { %p3663_p0 = pnand %p3662_p13, %p3656_p6 }
  0x4d   : > { %3666 = shalt.err (!%p3663_p0)
}
  0x4e   : > { %3502 = dma.hbm_to_vmem [thread:$0]  (!%p3923_p2), %s5690_s2, 640, %s3927_s10, [#allocation6]  }
  0x4f   : > { %s30_s13 = sadd.s32 1, %s3791_s20  ;;  %s33_s14 = sadd.s32 1, %s3795_s21 }
  0x50   : > { %p31_p5 = scmp.ge.s32.totalorder %s30_s13, 2  ;;  %s195_s23 = sand.u32 1, %s3779_s17  }
  0x51   : > { %s3479_s24 = smul.u32 1280, %s195_s23  ;;  %p5693_p7 = scmp.ne.s32.totalorder %s5687_s8, 0 }
  0x52   : > { %s5880_s13 = smov (%p31_p5, %s30_s13), 0  ;;  %s5882_s14 = smov (!%p31_p5, %s33_s14), %s3795_s21 }
  0x53   : > { %5691 = sst [smem:[#allocation14_spill]] %s5880_s13  ;;  %s38_s11 = ssub.s32 %s3791_s20, %s5880_s13 }
  0x54   : > { %p35_p9 = scmp.ge.s32.totalorder %s5882_s14, 2  ;;  %s3480_s27 = smul.u32 160, %s3791_s20 }
  0x55   : > { %s3481_s6 = smul.u32 320, %s3795_s21  ;;  %s199_s9 = scalar_lea.vmem [#allocation2], %s3479_s24 }
  0x56   : > { %s209_s10 = sshll.u32 %s199_s9, 4  ;;  %s5884_s14 = smov (%p35_p9, %s5882_s14), 0  ;;  %s3988_s10 = int_to_ptr.vmem [resolvable:$true] %s209_s10 }
  0x57   : > { %s206_s7 = sadd.s32 %s3481_s6, %s3480_s27  ;;  %s37_s25 = ssub.s32 %s3795_s21, %s5884_s14 }
  0x58   : > { %s3112_s12 = sshll.u32 %s206_s7, 7  ;;  %s39_s1 = sor.u32 %s38_s11, %s37_s25 }
  0x59   : > { %s3995_s13 = scalar_lea.hbm %s5663_s0, %s3112_s12  ;;  %p40_p2 = scmp.eq.s32.totalorder %s39_s1, 0 }
  0x5a   : > { %s5692_s24 = sadd.s32 1, %s3779_s17  ;;  %s4002_s20 = scalar_lea.sflag [#allocation3], %s195_s23 }
  0x5b   : > { %s4000_s9 = scalar_select %p40_p2, %s3779_s17, %s5692_s24  }
  0x5c   : > { %s3667_s27 = scalar_lea.hbm %s3995_s13, 20480  ;;  %p3669_p8 = pneg %p5693_p7 }
  0x5d   : > { %p3668_p3 = scmp.ne.s32.totalorder %s3995_s13, %s3667_s27  ;;  %s3672_s11 = scalar_lea.hbm %s5663_s0, 81920 }
  0x5e   : > { %p3673_p4 = scmp.lt.u32.totalorder %s3995_s13, %s5663_s0  ;;  %p3674_p6 = scmp.lt.u32.totalorder %s3672_s11, %s3667_s27 }
  0x5f   : > { %p3670_p12 = pnand %p3669_p8, %p3668_p3  ;;  %p3676_p11 = scmp.lt.u32.totalorder %s3667_s27, %s3995_s13 }
  0x60   : > { %p3675_p10 = por %p3674_p6, %p3673_p4 }
  0x61   : > { %p3671_p1 = pneg %p3670_p12 }
  0x62   : > { %p3677_p13 = por %p3676_p11, %p3675_p10 }
  0x64   : > { %p3678_p0 = pnand %p3677_p13, %p3671_p1 }
  0x66   : > { %3681 = shalt.err (!%p3678_p0)
}
  0x67   : > { %s3682_s1 = scalar_lea.vmem %s3988_s10, 20480  ;;  %s3803_s23 = smov [#allocation2]  }
  0x68   : > { %p3683_p5 = scmp.ne.s32.totalorder %s3988_s10, %s3682_s1  ;;  %s3687_s25 = sshll.u32 %s3803_s23, 4  ;;  %s3688_s25 = int_to_ptr.vmem [resolvable:$false] %s3687_s25 }
  0x69   : > { %s3689_s12 = scalar_lea.vmem %s3688_s25, 40960  ;;  %p3690_p3 = scmp.lt.s32.totalorder %s3988_s10, %s3688_s25 }
  0x6a   : > { %p3685_p9 = pnand %p3683_p5, %p3669_p8  ;;  %p3691_p12 = scmp.lt.s32.totalorder %s3689_s12, %s3682_s1 }
  0x6c   : > { %p3686_p2 = pneg %p3685_p9  ;;  %p3692_p4 = por %p3691_p12, %p3690_p3 }
  0x6e   : > { %p3693_p6 = pnand %p3692_p4, %p3686_p2 }
  0x70   : > { %3696 = shalt.err (!%p3693_p6)
}
  0x71   : > { %s3804_s24 = smov 1280   ;;  %s3805_s27 = smov 80  }
  0x72   : > { %3506 = dma.hbm_to_vmem [thread:$0]  (!%p5693_p7), %s3995_s13, 20480, %s3988_s10, %s4002_s20, %s3804_s24, %s3804_s24, %s3805_s27  }
  0x73   : > { %p5694_p8 = scmp.ne.s32.totalorder %s5686_s5, 0 }
  0x75   : > { %221 = sbr.rel (%p5694_p8) target bundleno = 1218 (0x4c2), region = 36 }
  0x7c   : > { %s4033_s2 = sand.u32 1, %s3775_s16   ;;  %p5695_p1 = scmp.ne.s32.totalorder %s5682_s28, 0 }
  0x7d   : > { %s3482_s30 = smul.u32 1280, %s4033_s2  ;;  %s224_s11 = scalar_lea.sflag [#allocation3], %s4033_s2 }
  0x7f   : > { %s4039_s6 = scalar_lea.vmem [#allocation2], %s3482_s30 }
  0x80   : > { %3758 = dma.done.wait (%p5695_p1), %s224_s11, 20480  }
  0x81   : > { %3760 = vsyncadd (%p5695_p1), %s224_s11, 4294946816  ;;  %p5696_p7 = scmp.ne.s32.totalorder %s5680_s26, 0 }
  0x83   : > { %3762 = dma.done.wait (%p5696_p7), [#allocation6], 1280  }
  0x84   : > { %3764 = vsyncadd (%p5696_p7), [#allocation6], 4294966016  ;;  %v263_v0 = vld [vmem:[%s4039_s6 + $0x8] sm:$0xff]  ;;  %v273_v1 = vld [vmem:[%s4039_s6 + $0x58] sm:$0xff]  ;;  %vm1903_vm0 = vcmask 64512   ;;  %vm2144_vm1 = vcmask 1043456  }
  0x85   : > { %v262_v2 = vld [vmem:[%s4039_s6] sm:$0xff]  ;;  %v423_v3 = vpack.c.bf16 %v273_v1, %v263_v0  ;;  %v272_v4 = vld [vmem:[%s4039_s6 + $0x50] sm:$0xff]  ;;  %v283_v5 = vld [vmem:[%s4039_s6 + $0xa8] sm:$0xff]  ;;  %s5131_s7 = scalar_lea.vmem [#allocation8], %s3482_s30  ;;  %s3483_s30 = smul.u32 320, %s3787_s19 }
  0x86   : > { %v293_v6 = vld [vmem:[%s4039_s6 + $0xf8] sm:$0xff]  ;;  %v422_v7 = vpack.c.bf16 %v272_v4, %v262_v2  ;;  %v282_v9 = vld [vmem:[%s4039_s6 + $0xa0] sm:$0xff]  ;;  %v292_v10 = vld [vmem:[%s4039_s6 + $0xf0] sm:$0xff]  ;;  %s2996_s19 = sshll.u32 %s5131_s7, 4  ;;  %s2982_s24 = scalar_lea.sflag [#allocation4], %s4033_s2  ;;  %s5606_s19 = int_to_ptr.vmem [resolvable:$true] %s2996_s19 }
  0x87   : > { %v433_v8 = vpack.c.bf16 %v293_v6, %v283_v5  ;;  %542 = vmatprep.subr.bf16.mxu0 %v423_v3  ;;  %v303_v11 = vld [vmem:[%s4039_s6 + $0x148] sm:$0xff]  ;;  %v313_v12 = vld [vmem:[%s4039_s6 + $0x198] sm:$0xff]  ;;  %v432_v13 = vpack.c.bf16 %v292_v10, %v282_v9  ;;  %v4059_v15 = vld [vmem:[#allocation5] sm:$0xff]  ;;  %s2993_s1 = sadd.s32 %s3783_s18, %s3483_s30  ;;  %s3697_s27 = scalar_lea.vmem %s5606_s19, 20480 }
  0x88   : > { %543 = vmatpush1.bf16.xpose.msra.mxu0 %v422_v7  ;;  %v443_v14 = vpack.c.bf16 %v313_v12, %v303_v11  ;;  %v3117_v16 = vcombine.high %v4059_v15, %v4059_v15  ;;  %v302_v17 = vld [vmem:[%s4039_s6 + $0x140] sm:$0xff]  ;;  %v312_v18 = vld [vmem:[%s4039_s6 + $0x190] sm:$0xff]  ;;  %v323_v19 = vld [vmem:[%s4039_s6 + $0x1e8] sm:$0xff]  ;;  %v3116_v63 = vcombine.low %v4059_v15, %v4059_v15  ;;  %s3216_s23 = sshll.u32 %s2993_s1, 7  ;;  %p3698_p10 = scmp.ne.s32.totalorder %s5606_s19, %s3697_s27 }
  0x89   : > { %544 = vmatprep.subr.bf16.mxu0 %v433_v8  ;;  %v333_v20 = vld [vmem:[%s4039_s6 + $0x238] sm:$0xff]  ;;  %v442_v21 = vpack.c.bf16 %v312_v18, %v302_v17  ;;  %v742_v23 = vld [vmem:[#allocation7] sm:$0xff]  ;;  %v322_v24 = vld [vmem:[%s4039_s6 + $0x1e0] sm:$0xff]  ;;  %s5603_s18 = scalar_lea.hbm %s5667_s4, %s3216_s23  ;;  %p5869_p11 = scmp.ne.s32.totalorder %s5683_s29, 0 }
  0x8a   : > { %574 = vmatprep.mubr.bf16.mxu0 %v3117_v16  ;;  %v453_v22 = vpack.c.bf16 %v333_v20, %v323_v19  ;;  %v332_v25 = vld [vmem:[%s4039_s6 + $0x230] sm:$0xff]  ;;  %v3127_v26 = vcombine.high %v742_v23, %v742_v23  ;;  %v343_v27 = vld [vmem:[%s4039_s6 + $0x288] sm:$0xff]  ;;  %v353_v28 = vld [vmem:[%s4039_s6 + $0x2d8] sm:$0xff]  ;;  %v3126_v57 = vcombine.low %v742_v23, %v742_v23  ;;  %s3807_s11 = smov [#allocation8]  }
  0x8b   : > { %v452_v29 = vpack.c.bf16 %v332_v25, %v322_v24  ;;  %v463_v30 = vpack.c.bf16 %v353_v28, %v343_v27  ;;  %v342_v31 = vld [vmem:[%s4039_s6 + $0x280] sm:$0xff]  ;;  %v352_v32 = vld [vmem:[%s4039_s6 + $0x2d0] sm:$0xff]  ;;  %v363_v33 = vld [vmem:[%s4039_s6 + $0x328] sm:$0xff]  ;;  %p3699_p13 = pnand %p3698_p10, %p5869_p11  ;;  %s3701_s20 = sshll.u32 %s3807_s11, 4  ;;  %s3702_s20 = int_to_ptr.vmem [resolvable:$false] %s3701_s20 }
  0x8c   : > { %1759 = vxpose.xlu0.c.b16.start.end [1/1] (short) %v3127_v26, 128  ;;  %v373_v34 = vld [vmem:[%s4039_s6 + $0x378] sm:$0xff]  ;;  %v462_v35 = vpack.c.bf16 %v352_v32, %v342_v31  ;;  %v362_v37 = vld [vmem:[%s4039_s6 + $0x320] sm:$0xff]  ;;  %v372_v38 = vld [vmem:[%s4039_s6 + $0x370] sm:$0xff]  ;;  %1743 = vxpose.xlu1.c.b16.start.end [1/1] (short) %v3126_v57, 128  ;;  %s3703_s26 = scalar_lea.vmem %s3702_s20, 40960  ;;  %p3704_p5 = scmp.lt.s32.totalorder %s5606_s19, %s3702_s20 }
  0x8d   : > { %v473_v36 = vpack.c.bf16 %v373_v34, %v363_v33  ;;  %v383_v39 = vld [vmem:[%s4039_s6 + $0x3c8] sm:$0xff]  ;;  %v393_v40 = vld [vmem:[%s4039_s6 + $0x418] sm:$0xff]  ;;  %v472_v41 = vpack.c.bf16 %v372_v38, %v362_v37  ;;  %v382_v43 = vld [vmem:[%s4039_s6 + $0x3c0] sm:$0xff]  ;;  %p3700_p0 = pneg %p3699_p13  ;;  %p3705_p9 = scmp.lt.s32.totalorder %s3703_s26, %s3697_s27 }
  0x8e   : > { %v483_v42 = vpack.c.bf16 %v393_v40, %v383_v39  ;;  %v392_v44 = vld [vmem:[%s4039_s6 + $0x410] sm:$0xff]  ;;  %v403_v46 = vld [vmem:[%s4039_s6 + $0x468] sm:$0xff]  ;;  %v413_v47 = vld [vmem:[%s4039_s6 + $0x4b8] sm:$0xff] }
  0x8f   : > { %v743_v45 = vld [vmem:[#allocation7 + $0x8] sm:$0xff]  ;;  %v482_v48 = vpack.c.bf16 %v392_v44, %v382_v43  ;;  %v493_v50 = vpack.c.bf16 %v413_v47, %v403_v46  ;;  %v402_v51 = vld [vmem:[%s4039_s6 + $0x460] sm:$0xff]  ;;  %v265_v53 = vld [vmem:[%s4039_s6 + $0x18] sm:$0xff]  ;;  %p3706_p2 = por %p3705_p9, %p3704_p5 }
  0x90   : > { %545 = vmatpush1.bf16.xpose.msra.mxu0 %v432_v13  ;;  %v3128_v49 = vcombine.low %v743_v45, %v743_v45  ;;  %v412_v52 = vld [vmem:[%s4039_s6 + $0x4b0] sm:$0xff]  ;;  %v275_v54 = vld [vmem:[%s4039_s6 + $0x68] sm:$0xff]  ;;  %v274_v59 = vld [vmem:[%s4039_s6 + $0x60] sm:$0xff]  ;;  %v3129_v23 = vcombine.high %v743_v45, %v743_v45 }
  0x91   : > { %546 = vmatprep.subr.bf16.mxu0 %v443_v14  ;;  %v492_v55 = vpack.c.bf16 %v412_v52, %v402_v51  ;;  %v425_v56 = vpack.c.bf16 %v275_v54, %v265_v53  ;;  %v264_v58 = vld [vmem:[%s4039_s6 + $0x10] sm:$0xff]  ;;  %v4089_v60 = vld [vmem:[#allocation5 + $0x8] sm:$0xff]  ;;  %v285_v61 = vld [vmem:[%s4039_s6 + $0xb8] sm:$0xff]  ;;  %p3707_p3 = pnand %p3706_p2, %p3700_p0 }
  0x92   : > { %v295_v62 = vld [vmem:[%s4039_s6 + $0x108] sm:$0xff]  ;;  %v424_v0 = vpack.c.bf16 %v274_v59, %v264_v58  ;;  %v3119_v1 = vcombine.high %v4089_v60, %v4089_v60  ;;  %v284_v3 = vld [vmem:[%s4039_s6 + $0xb0] sm:$0xff]  ;;  %v294_v4 = vld [vmem:[%s4039_s6 + $0x100] sm:$0xff]  ;;  %v3118_v57 = vcombine.low %v4089_v60, %v4089_v60 }
  0x93   : > { %v435_v2 = vpack.c.bf16 %v295_v62, %v285_v61  ;;  %v305_v5 = vld [vmem:[%s4039_s6 + $0x158] sm:$0xff]  ;;  %v315_v6 = vld [vmem:[%s4039_s6 + $0x1a8] sm:$0xff]  ;;  %v434_v7 = vpack.c.bf16 %v294_v4, %v284_v3  ;;  %v304_v10 = vld [vmem:[%s4039_s6 + $0x150] sm:$0xff] }
  0x94   : > { %v445_v8 = vpack.c.bf16 %v315_v6, %v305_v5  ;;  %v744_v9 = vld [vmem:[#allocation7 + $0x10] sm:$0xff]  ;;  %v314_v11 = vld [vmem:[%s4039_s6 + $0x1a0] sm:$0xff]  ;;  %v335_v14 = vld [vmem:[%s4039_s6 + $0x248] sm:$0xff] }
  0x95   : > { %v3130_v12 = vcombine.low %v744_v9, %v744_v9  ;;  %v325_v13 = vld [vmem:[%s4039_s6 + $0x1f8] sm:$0xff]  ;;  %v444_v15 = vpack.c.bf16 %v314_v11, %v304_v10  ;;  %v324_v17 = vld [vmem:[%s4039_s6 + $0x1f0] sm:$0xff]  ;;  %v334_v18 = vld [vmem:[%s4039_s6 + $0x240] sm:$0xff] }
  0x96   : > { %v455_v16 = vpack.c.bf16 %v335_v14, %v325_v13  ;;  %v345_v19 = vld [vmem:[%s4039_s6 + $0x298] sm:$0xff]  ;;  %v355_v20 = vld [vmem:[%s4039_s6 + $0x2e8] sm:$0xff]  ;;  %v344_v24 = vld [vmem:[%s4039_s6 + $0x290] sm:$0xff] }
  0x97   : > { %v354_v25 = vld [vmem:[%s4039_s6 + $0x2e0] sm:$0xff]  ;;  %v365_v26 = vld [vmem:[%s4039_s6 + $0x338] sm:$0xff]  ;;  %v375_v27 = vld [vmem:[%s4039_s6 + $0x388] sm:$0xff] }
  0x98   : > { %547 = vmatpush1.bf16.xpose.msra.mxu0 %v442_v21  ;;  %v454_v21 = vpack.c.bf16 %v334_v18, %v324_v17  ;;  %v464_v28 = vpack.c.bf16 %v354_v25, %v344_v24  ;;  %v374_v31 = vld [vmem:[%s4039_s6 + $0x380] sm:$0xff]  ;;  %v385_v32 = vld [vmem:[%s4039_s6 + $0x3d8] sm:$0xff]  ;;  %v395_v33 = vld [vmem:[%s4039_s6 + $0x428] sm:$0xff] }
  0x99   : > { %548 = vmatprep.subr.bf16.mxu0 %v453_v22  ;;  %v465_v22 = vpack.c.bf16 %v355_v20, %v345_v19  ;;  %v4117_v34 = vld [vmem:[#allocation7 + $0x18] sm:$0xff]  ;;  %v384_v38 = vld [vmem:[%s4039_s6 + $0x3d0] sm:$0xff]  ;;  %v405_v40 = vld [vmem:[%s4039_s6 + $0x478] sm:$0xff] }
  0x9a   : > { %v3132_v37 = vcombine.low %v4117_v34, %v4117_v34  ;;  %v394_v39 = vld [vmem:[%s4039_s6 + $0x420] sm:$0xff]  ;;  %v404_v44 = vld [vmem:[%s4039_s6 + $0x470] sm:$0xff]  ;;  %v267_v46 = vld [vmem:[%s4039_s6 + $0x28] sm:$0xff]  ;;  %v3133_v17 = vcombine.high %v4117_v34, %v4117_v34 }
  0x9b   : > { %v414_v45 = vld [vmem:[%s4039_s6 + $0x4c0] sm:$0xff]  ;;  %v277_v47 = vld [vmem:[%s4039_s6 + $0x78] sm:$0xff]  ;;  %v276_v52 = vld [vmem:[%s4039_s6 + $0x70] sm:$0xff] }
  0x9c   : > { %v266_v51 = vld [vmem:[%s4039_s6 + $0x20] sm:$0xff]  ;;  %v4131_v53 = vld [vmem:[#allocation5 + $0x10] sm:$0xff]  ;;  %v317_v3 = vld [vmem:[%s4039_s6 + $0x1b8] sm:$0xff] }
  0x9d   : > { %v426_v58 = vpack.c.bf16 %v276_v52, %v266_v51  ;;  %v3121_v59 = vcombine.high %v4131_v53, %v4131_v53  ;;  %v327_v11 = vld [vmem:[%s4039_s6 + $0x208] sm:$0xff]  ;;  %v326_v18 = vld [vmem:[%s4039_s6 + $0x200] sm:$0xff]  ;;  %v336_v19 = vld [vmem:[%s4039_s6 + $0x250] sm:$0xff] }
  0x9e   : > { %v366_v34 = vld [vmem:[%s4039_s6 + $0x340] sm:$0xff]  ;;  %v749_v51 = vld [vmem:[%s5666_s3 + $0x8] sm:$0xff] }
  0xa0   : > { %549 = vmatpush1.bf16.xpose.msra.mxu0 %v452_v29  ;;  %v475_v29 = vpack.c.bf16 %v375_v27, %v365_v26  ;;  %v346_v26 = vld [vmem:[%s4039_s6 + $0x2a0] sm:$0xff]  ;;  %v356_v27 = vld [vmem:[%s4039_s6 + $0x2f0] sm:$0xff] }
  0xa1   : > { %550 = vmatprep.subr.bf16.mxu0 %v463_v30  ;;  %v364_v30 = vld [vmem:[%s4039_s6 + $0x330] sm:$0xff] }
  0xa8   : > { %551 = vmatpush1.bf16.xpose.msra.mxu0 %v462_v35  ;;  %v474_v35 = vpack.c.bf16 %v374_v31, %v364_v30  ;;  %v377_v30 = vld [vmem:[%s4039_s6 + $0x398] sm:$0xff]  ;;  %v466_v31 = vpack.c.bf16 %v356_v27, %v346_v26  ;;  %v288_v26 = vld [vmem:[%s4039_s6 + $0xd0] sm:$0xff]  ;;  %v298_v27 = vld [vmem:[%s4039_s6 + $0x120] sm:$0xff] }
  0xa9   : > { %552 = vmatprep.subr.bf16.mxu0 %v473_v36  ;;  %1775 = vxpose.xlu0.c.b16.start.end [1/1] (short) %v3128_v49, 128  ;;  %v485_v36 = vpack.c.bf16 %v395_v33, %v385_v32  ;;  %v494_v49 = vpack.c.bf16 %v414_v45, %v404_v44  ;;  %v748_v44 = vld [vmem:[%s5666_s3] sm:$0xff] }
  0xaa   : > { %1791 = vxpose.xlu1.c.b16.start.end [1/1] (short) %v3129_v23, 128  ;;  %v456_v23 = vpack.c.bf16 %v336_v19, %v326_v18 }
  0xb0   : > { %553 = vmatpush1.bf16.xpose.msra.mxu0 %v472_v41  ;;  %v415_v41 = vld [vmem:[%s4039_s6 + $0x4c8] sm:$0xff] }
  0xb1   : > { %554 = vmatprep.subr.bf16.mxu0 %v483_v42  ;;  %v484_v42 = vpack.c.bf16 %v394_v39, %v384_v38  ;;  %v495_v43 = vpack.c.bf16 %v415_v41, %v405_v40  ;;  %v397_v38 = vld [vmem:[%s4039_s6 + $0x438] sm:$0xff] }
  0xb8   : > { %555 = vmatpush1.bf16.xpose.msra.mxu0 %v482_v48  ;;  %v3131_v48 = vcombine.high %v744_v9, %v744_v9  ;;  %v316_v9 = vld [vmem:[%s4039_s6 + $0x1b0] sm:$0xff] }
  0xb9   : > { %556 = vmatprep.subr.bf16.mxu0 %v493_v50  ;;  %v427_v50 = vpack.c.bf16 %v277_v47, %v267_v46  ;;  %v407_v46 = vld [vmem:[%s4039_s6 + $0x488] sm:$0xff]  ;;  %v417_v47 = vld [vmem:[%s4039_s6 + $0x4d8] sm:$0xff] }
  0xc0   : > { %557 = vmatpush1.bf16.xpose.msra.mxu0 %v492_v55  ;;  %v287_v55 = vld [vmem:[%s4039_s6 + $0xc8] sm:$0xff] }
  0xc1   : > { %582 = vmatprep.subr.bf16.mxu0 %v425_v56  ;;  %v297_v56 = vld [vmem:[%s4039_s6 + $0x118] sm:$0xff] }
  0xc2   : > { %v437_v61 = vpack.c.bf16 %v297_v56, %v287_v55 }
  0xc6   : > { %1807 = vxpose.xlu0.c.b16.start.end [1/1] (short) %v3130_v12, 128  ;;  %v337_v12 = vld [vmem:[%s4039_s6 + $0x258] sm:$0xff] }
  0xc7   : > { %575 = vmatmul.mubr.bf16.vlgmr.msra.gmra.mrb[0].mxu0 %v3116_v63  ;;  %1823 = vxpose.xlu1.c.b16.start.end [1/1] (short) %v3131_v48, 128  ;;  %v4143_v63 = vld [vmem:[#allocation7 + $0x20] sm:$0xff]  ;;  %v457_v14 = vpack.c.bf16 %v337_v12, %v327_v11  ;;  %v4231_v11 = vld [vmem:[#allocation5 + $0x18] sm:$0xff]  ;;  %v756_v12 = vld [vmem:[%s5666_s3 + $0x40] sm:$0xff] }
  0xc8   : > { %583 = vmatpush1.bf16.xpose.msra.mxu0 %v424_v0  ;;  %614 = vmatprep.mubr.bf16.mxu0 %v3119_v1  ;;  %v286_v0 = vld [vmem:[%s4039_s6 + $0xc0] sm:$0xff]  ;;  %v296_v1 = vld [vmem:[%s4039_s6 + $0x110] sm:$0xff]  ;;  %v3134_v4 = vcombine.low %v4143_v63, %v4143_v63  ;;  %v3135_v55 = vcombine.high %v4143_v63, %v4143_v63  ;;  %v3123_v19 = vcombine.high %v4231_v11, %v4231_v11 }
  0xc9   : > { %584 = vmatprep.subr.bf16.mxu0 %v435_v2  ;;  %v307_v2 = vld [vmem:[%s4039_s6 + $0x168] sm:$0xff]  ;;  %v436_v5 = vpack.c.bf16 %v296_v1, %v286_v0  ;;  %v269_v0 = vld [vmem:[%s4039_s6 + $0x38] sm:$0xff] }
  0xca   : > { %v447_v6 = vpack.c.bf16 %v317_v3, %v307_v2  ;;  %v279_v1 = vld [vmem:[%s4039_s6 + $0x88] sm:$0xff] }
  0xcb   : > { %v429_v3 = vpack.c.bf16 %v279_v1, %v269_v0  ;;  %v328_v1 = vld [vmem:[%s4039_s6 + $0x210] sm:$0xff] }
  0xd0   : > { %585 = vmatpush1.bf16.xpose.msra.mxu0 %v434_v7 }
  0xd1   : > { %586 = vmatprep.subr.bf16.mxu0 %v445_v8  ;;  %v306_v8 = vld [vmem:[%s4039_s6 + $0x160] sm:$0xff] }
  0xd2   : > { %v446_v13 = vpack.c.bf16 %v316_v9, %v306_v8  ;;  %v278_v9 = vld [vmem:[%s4039_s6 + $0x80] sm:$0xff] }
  0xd8   : > { %587 = vmatpush1.bf16.xpose.msra.mxu0 %v444_v15 }
  0xd9   : > { %588 = vmatprep.subr.bf16.mxu0 %v455_v16  ;;  %v3806_v16 = vmov 0  }
  0xe0   : > { %589 = vmatpush1.bf16.xpose.msra.mxu0 %v454_v21  ;;  %v347_v21 = vld [vmem:[%s4039_s6 + $0x2a8] sm:$0xff] }
  0xe1   : > { %590 = vmatprep.subr.bf16.mxu0 %v465_v22  ;;  %v357_v22 = vld [vmem:[%s4039_s6 + $0x2f8] sm:$0xff] }
  0xe2   : > { %v467_v24 = vpack.c.bf16 %v357_v22, %v347_v21 }
  0xe3   : > { %1839 = vxpose.xlu0.c.b16.start.end [1/1] (short) %v3132_v37, 128  ;;  %v387_v37 = vld [vmem:[%s4039_s6 + $0x3e8] sm:$0xff] }
  0xe4   : > { %1855 = vxpose.xlu1.c.b16.start.end [1/1] (short) %v3133_v17, 128  ;;  %v487_v40 = vpack.c.bf16 %v397_v38, %v387_v37  ;;  %v299_v17 = vld [vmem:[%s4039_s6 + $0x128] sm:$0xff] }
  0xe8   : > { %591 = vmatpush1.bf16.xpose.msra.mxu0 %v464_v28 }
  0xe9   : > { %592 = vmatprep.subr.bf16.mxu0 %v475_v29  ;;  %v367_v29 = vld [vmem:[%s4039_s6 + $0x348] sm:$0xff] }
  0xea   : > { %v477_v32 = vpack.c.bf16 %v377_v30, %v367_v29  ;;  %v309_v30 = vld [vmem:[%s4039_s6 + $0x178] sm:$0xff] }
  0xf0   : > { %593 = vmatpush1.bf16.xpose.msra.mxu0 %v474_v35  ;;  %v376_v35 = vld [vmem:[%s4039_s6 + $0x390] sm:$0xff] }
  0xf1   : > { %594 = vmatprep.subr.bf16.mxu0 %v485_v36  ;;  %v476_v39 = vpack.c.bf16 %v376_v35, %v366_v34  ;;  %v438_v34 = vpack.c.bf16 %v298_v27, %v288_v26  ;;  %v348_v26 = vld [vmem:[%s4039_s6 + $0x2b0] sm:$0xff]  ;;  %v358_v27 = vld [vmem:[%s4039_s6 + $0x300] sm:$0xff] }
  0xf2   : > { %v4133_v54 = vpop.trf.xlu0  ;;  %v4199_v48 = vpop.trf.xlu1 }
  0xf3   : > { %3302 = vmatprep.mubr.msk.bf16.mxu1 %vm1903_vm0, %v4199_v48  ;;  %v859_v48 = vld [vmem:[%s5666_s3 + $0x378] sm:$0xff] }
  0xf6   : > { %v4141_v62 = vpop.trf.xlu0  ;;  %v4208_v56 = vpop.trf.xlu1 }
  0xf8   : > { %595 = vmatpush1.bf16.xpose.msra.mxu0 %v484_v42  ;;  %v386_v42 = vld [vmem:[%s4039_s6 + $0x3e0] sm:$0xff] }
  0xf9   : > { %596 = vmatprep.subr.bf16.mxu0 %v495_v43  ;;  %v396_v43 = vld [vmem:[%s4039_s6 + $0x430] sm:$0xff] }
  0xfa   : > { %v4147_v60 = vpop.trf.xlu0  ;;  %v4219_v63 = vpop.trf.xlu1 }
  0xfe   : > { %v4153_v7 = vpop.trf.xlu0  ;;  %v4228_v8 = vpop.trf.xlu1 }
 0x100   : > { %597 = vmatpush1.bf16.xpose.msra.mxu0 %v494_v49  ;;  %1871 = vxpose.xlu0.c.b16.start.end [1/1] (short) %v3134_v4, 128  ;;  %v486_v49 = vpack.c.bf16 %v396_v43, %v386_v42  ;;  %v754_v4 = vld [vmem:[%s5666_s3 + $0x30] sm:$0xff]  ;;  %v318_v43 = vld [vmem:[%s4039_s6 + $0x1c0] sm:$0xff] }
 0x101   : > { %622 = vmatprep.subr.bf16.mxu0 %v427_v50  ;;  %v497_v50 = vpack.c.bf16 %v417_v47, %v407_v46  ;;  %1887 = vxpose.xlu1.c.b16.start.end [1/1] (short) %v3135_v55, 128  ;;  %v308_v42 = vld [vmem:[%s4039_s6 + $0x170] sm:$0xff]  ;;  %v329_v46 = vld [vmem:[%s4039_s6 + $0x218] sm:$0xff]  ;;  %v339_v47 = vld [vmem:[%s4039_s6 + $0x268] sm:$0xff] }
 0x102   : > { %v4157_v10 = vpop.trf.xlu0  ;;  %v4244_v21 = vpop.trf.xlu1  ;;  %v459_v55 = vpack.c.bf16 %v339_v47, %v329_v46  ;;  %v774_v47 = vld [vmem:[%s5666_s3 + $0xd0] sm:$0xff] }
 0x105   : > { %3590 = vset.pattern.permute.xlu1 %v3806_v16 }
 0x106   : > { %v4161_v15 = vpop.trf.xlu0 }
 0x107   : > { %615 = vmatmul.mubr.bf16.vlgmr.msra.gmra.mrb[0].mxu0 %v3118_v57  ;;  %v406_v57 = vld [vmem:[%s4039_s6 + $0x480] sm:$0xff] }
 0x108   : > { %623 = vmatpush1.bf16.xpose.msra.mxu0 %v426_v58  ;;  %654 = vmatprep.mubr.bf16.mxu0 %v3121_v59  ;;  %v416_v58 = vld [vmem:[%s4039_s6 + $0x4d0] sm:$0xff]  ;;  %v752_v59 = vld [vmem:[%s5666_s3 + $0x20] sm:$0xff] }
 0x109   : > { %624 = vmatprep.subr.bf16.mxu0 %v437_v61  ;;  %3589 = vset.pattern.permute.xlu0 %v3806_v16  ;;  %v496_v2 = vpack.c.bf16 %v416_v58, %v406_v57  ;;  %v3120_v16 = vcombine.low %v4131_v53, %v4131_v53  ;;  %v4251_v53 = vpop.trf.xlu1  ;;  %v766_v58 = vld [vmem:[%s5666_s3 + $0x90] sm:$0xff] }
 0x10a   : > { %v4168_v20 = vpop.trf.xlu0 }
 0x10d   : > { %v4262_v35 = vpop.trf.xlu1 }
 0x10e   : > { %v4172_v25 = vpop.trf.xlu0 }
 0x110   : > { %625 = vmatpush1.bf16.xpose.msra.mxu0 %v436_v5 }
 0x111   : > { %626 = vmatprep.subr.bf16.mxu0 %v447_v6  ;;  %v268_v6 = vld [vmem:[%s4039_s6 + $0x30] sm:$0xff] }
 0x112   : > { %v4176_v28 = vpop.trf.xlu0  ;;  %v428_v18 = vpack.c.bf16 %v278_v9, %v268_v6  ;;  %v359_v6 = vld [vmem:[%s4039_s6 + $0x308] sm:$0xff]  ;;  %v768_v9 = vld [vmem:[%s5666_s3 + $0xa0] sm:$0xff] }
 0x116   : > { %v4180_v33 = vpop.trf.xlu0 }
 0x118   : > { %627 = vmatpush1.bf16.xpose.msra.mxu0 %v446_v13 }
 0x119   : > { %628 = vmatprep.subr.bf16.mxu0 %v457_v14  ;;  %v289_v14 = vld [vmem:[%s4039_s6 + $0xd8] sm:$0xff] }
 0x11a   : > { %v4184_v36 = vpop.trf.xlu0  ;;  %v439_v22 = vpack.c.bf16 %v299_v17, %v289_v14 }
 0x11e   : > { %v4188_v41 = vpop.trf.xlu0 }
 0x120   : > { %629 = vmatpush1.bf16.xpose.msra.mxu0 %v456_v23 }
 0x121   : > { %630 = vmatprep.subr.bf16.mxu0 %v467_v24  ;;  %v758_v24 = vld [vmem:[%s5666_s3 + $0x50] sm:$0xff] }
 0x122   : > { %v4195_v45 = vpop.trf.xlu0 }
 0x125   : > { %910 = vperm.xlu0 %3589, %v748_v44  }
 0x126   : > { %v4204_v52 = vpop.trf.xlu0 }
 0x128   : > { %631 = vmatpush1.bf16.xpose.msra.mxu0 %v466_v31  ;;  %v319_v31 = vld [vmem:[%s4039_s6 + $0x1c8] sm:$0xff] }
 0x129   : > { %632 = vmatprep.subr.bf16.mxu0 %v477_v32  ;;  %915 = vperm.xlu0 %3589, %v749_v51   ;;  %v760_v32 = vld [vmem:[%s5666_s3 + $0x60] sm:$0xff]  ;;  %v449_v37 = vpack.c.bf16 %v319_v31, %v309_v30  ;;  %v369_v31 = vld [vmem:[%s4039_s6 + $0x358] sm:$0xff] }
 0x12a   : > { %v4215_v61 = vpop.trf.xlu0 }
 0x12d   : > { %930 = vperm.xlu0 %3589, %v752_v59   ;;  %v750_v59 = vld [vmem:[%s5666_s3 + $0x10] sm:$0xff] }
 0x12e   : > { %v4224_v5 = vpop.trf.xlu0  ;;  %920 = vperm.xlu1 %3590, %v750_v59  }
 0x130   : > { %633 = vmatpush1.bf16.xpose.msra.mxu0 %v476_v39  ;;  %v762_v39 = vld [vmem:[%s5666_s3 + $0x70] sm:$0xff] }
 0x131   : > { %634 = vmatprep.subr.bf16.mxu0 %v487_v40  ;;  %940 = vperm.xlu0 %3589, %v754_v4   ;;  %v4269_v40 = vpop.trf.xlu1  ;;  %v349_v4 = vld [vmem:[%s4039_s6 + $0x2b8] sm:$0xff] }
 0x132   : > { %v4236_v13 = vpop.trf.xlu0 }
 0x135   : > { %950 = vperm.xlu0 %3589, %v756_v12   ;;  %v4280_v51 = vpop.trf.xlu1  ;;  %v751_v12 = vld [vmem:[%s5666_s3 + $0x18] sm:$0xff] }
 0x136   : > { %v4246_v23 = vpop.trf.xlu0  ;;  %925 = vperm.xlu1 %3590, %v751_v12  }
 0x138   : > { %635 = vmatpush1.bf16.xpose.msra.mxu0 %v486_v49  ;;  %v764_v49 = vld [vmem:[%s5666_s3 + $0x80] sm:$0xff] }
 0x139   : > { %636 = vmatprep.subr.bf16.mxu0 %v497_v50  ;;  %960 = vperm.xlu0 %3589, %v758_v24   ;;  %v448_v50 = vpack.c.bf16 %v318_v43, %v308_v42  ;;  %v4290_v0 = vpop.trf.xlu1 }
 0x13a   : > { %v4255_v29 = vpop.trf.xlu0 }
 0x13d   : > { %970 = vperm.xlu0 %3589, %v760_v32   ;;  %v4304_v17 = vpop.trf.xlu1  ;;  %v379_v32 = vld [vmem:[%s4039_s6 + $0x3a8] sm:$0xff] }
 0x13e   : > { %v4264_v38 = vpop.trf.xlu0  ;;  %v479_v43 = vpack.c.bf16 %v379_v32, %v369_v31  ;;  %v398_v31 = vld [vmem:[%s4039_s6 + $0x440] sm:$0xff] }
 0x140   : > { %637 = vmatpush1.bf16.xpose.msra.mxu0 %v496_v2  ;;  %v338_v2 = vld [vmem:[%s4039_s6 + $0x260] sm:$0xff] }
 0x141   : > { %662 = vmatprep.subr.bf16.mxu0 %v429_v3  ;;  %980 = vperm.xlu0 %3589, %v762_v39   ;;  %v458_v14 = vpack.c.bf16 %v338_v2, %v328_v1  ;;  %v4314_v24 = vpop.trf.xlu1  ;;  %v468_v39 = vpack.c.bf16 %v358_v27, %v348_v26  ;;  %v389_v1 = vld [vmem:[%s4039_s6 + $0x3f8] sm:$0xff]  ;;  %v399_v2 = vld [vmem:[%s4039_s6 + $0x448] sm:$0xff]  ;;  %v388_v27 = vld [vmem:[%s4039_s6 + $0x3f0] sm:$0xff] }
 0x142   : > { %v4273_v44 = vpop.trf.xlu0 }
 0x145   : > { %990 = vperm.xlu0 %3589, %v764_v49   ;;  %v4328_v42 = vpop.trf.xlu1  ;;  %v757_v49 = vld [vmem:[%s5666_s3 + $0x48] sm:$0xff] }
 0x146   : > { %v4282_v57 = vpop.trf.xlu0 }
 0x147   : > { %655 = vmatmul.mubr.bf16.vlgmr.msra.gmra.mrb[0].mxu0 %v3120_v16  ;;  %v469_v16 = vpack.c.bf16 %v359_v6, %v349_v4  ;;  %v776_v4 = vld [vmem:[%s5666_s3 + $0xe0] sm:$0xff]  ;;  %v759_v6 = vld [vmem:[%s5666_s3 + $0x58] sm:$0xff] }
 0x148   : > { %663 = vmatpush1.bf16.xpose.msra.mxu0 %v428_v18  ;;  %694 = vmatprep.mubr.bf16.mxu0 %v3123_v19  ;;  %v770_v19 = vld [vmem:[%s5666_s3 + $0xb0] sm:$0xff] }
 0x149   : > { %664 = vmatprep.subr.bf16.mxu0 %v439_v22  ;;  %1000 = vperm.xlu0 %3589, %v766_v58   ;;  %v753_v22 = vld [vmem:[%s5666_s3 + $0x28] sm:$0xff]  ;;  %v378_v58 = vld [vmem:[%s4039_s6 + $0x3a0] sm:$0xff] }
 0x14a   : > { %v4294_v3 = vpop.trf.xlu0  ;;  %935 = vperm.xlu1 %3590, %v753_v22   ;;  %v761_v22 = vld [vmem:[%s5666_s3 + $0x68] sm:$0xff] }
 0x14d   : > { %1010 = vperm.xlu0 %3589, %v768_v9  }
 0x14e   : > { %v4306_v18 = vpop.trf.xlu0 }
 0x150   : > { %665 = vmatpush1.bf16.xpose.msra.mxu0 %v438_v34  ;;  %v772_v34 = vld [vmem:[%s5666_s3 + $0xc0] sm:$0xff] }
 0x151   : > { %666 = vmatprep.subr.bf16.mxu0 %v449_v37  ;;  %1020 = vperm.xlu0 %3589, %v770_v19   ;;  %v755_v37 = vld [vmem:[%s5666_s3 + $0x38] sm:$0xff]  ;;  %v778_v19 = vld [vmem:[%s5666_s3 + $0xf0] sm:$0xff] }
 0x152   : > { %v4318_v30 = vpop.trf.xlu0  ;;  %945 = vperm.xlu1 %3590, %v755_v37   ;;  %v419_v37 = vld [vmem:[%s4039_s6 + $0x4e8] sm:$0xff] }
 0x155   : > { %1030 = vperm.xlu0 %3589, %v772_v34   ;;  %v409_v34 = vld [vmem:[%s4039_s6 + $0x498] sm:$0xff] }
 0x156   : > { %v4330_v46 = vpop.trf.xlu0  ;;  %955 = vperm.xlu1 %3590, %v757_v49  }
 0x157   : > { %5697 = vst [vmem:[#allocation15_spill] sm:$0xff] %v4330_v46  ;;  %v380_v46 = vld [vmem:[%s4039_s6 + $0x3b0] sm:$0xff] }
 0x158   : > { %667 = vmatpush1.bf16.xpose.msra.mxu0 %v448_v50  ;;  %v4338_v50 = vpop.trf.xlu1 }
 0x159   : > { %668 = vmatprep.subr.bf16.mxu0 %v459_v55  ;;  %v368_v55 = vld [vmem:[%s4039_s6 + $0x350] sm:$0xff]  ;;  %1040 = vperm.xlu0 %3589, %v774_v47   ;;  %v488_v47 = vpack.c.bf16 %v398_v31, %v388_v27  ;;  %v784_v27 = vld [vmem:[%s5666_s3 + $0x120] sm:$0xff]  ;;  %v767_v31 = vld [vmem:[%s5666_s3 + $0x98] sm:$0xff] }
 0x15a   : > { %v4342_v59 = vpop.trf.xlu0  ;;  %v478_v9 = vpack.c.bf16 %v378_v58, %v368_v55  ;;  %965 = vperm.xlu1 %3590, %v759_v6   ;;  %v499_v55 = vpack.c.bf16 %v419_v37, %v409_v34  ;;  %v408_v6 = vld [vmem:[%s4039_s6 + $0x490] sm:$0xff] }
 0x15b   : > { %5698 = vst [vmem:[#allocation16_spill] sm:$0xff] %v4342_v59 }
 0x15c   : > { %v4352_v12 = vpop.trf.xlu1 }
 0x15d   : > { %1050 = vperm.xlu0 %3589, %v776_v4  }
 0x15e   : > { %975 = vperm.xlu1 %3590, %v761_v22   ;;  %v281_v22 = vld [vmem:[%s4039_s6 + $0x98] sm:$0xff] }
 0x160   : > { %669 = vmatpush1.bf16.xpose.msra.mxu0 %v458_v14  ;;  %v489_v14 = vpack.c.bf16 %v399_v2, %v389_v1  ;;  %v4362_v26 = vpop.trf.xlu1  ;;  %v782_v1 = vld [vmem:[%s5666_s3 + $0x110] sm:$0xff]  ;;  %v765_v2 = vld [vmem:[%s5666_s3 + $0x88] sm:$0xff] }
 0x161   : > { %670 = vmatprep.subr.bf16.mxu0 %v469_v16  ;;  %v4354_v16 = vpop.trf.xlu0  ;;  %1060 = vperm.xlu0 %3589, %v778_v19   ;;  %v271_v19 = vld [vmem:[%s4039_s6 + $0x48] sm:$0xff] }
 0x162   : > { %5699 = vst [vmem:[#allocation17_spill] sm:$0xff] %v4354_v16  ;;  %v320_v16 = vld [vmem:[%s4039_s6 + $0x1d0] sm:$0xff] }
 0x164   : > { %v4376_v49 = vpop.trf.xlu1 }
 0x165   : > { %v4366_v32 = vpop.trf.xlu0 }
 0x166   : > { %5700 = vst [vmem:[#allocation18_spill] sm:$0xff] %v4366_v32  ;;  %v310_v32 = vld [vmem:[%s4039_s6 + $0x180] sm:$0xff] }
 0x168   : > { %671 = vmatpush1.bf16.xpose.msra.mxu0 %v468_v39  ;;  %v780_v39 = vld [vmem:[%s5666_s3 + $0x100] sm:$0xff]  ;;  %v4386_v4 = vpop.trf.xlu1 }
 0x169   : > { %672 = vmatprep.subr.bf16.mxu0 %v479_v43  ;;  %v763_v43 = vld [vmem:[%s5666_s3 + $0x78] sm:$0xff]  ;;  %1070 = vperm.xlu0 %3589, %v780_v39   ;;  %v4378_v58 = vpop.trf.xlu0  ;;  %v431_v39 = vpack.c.bf16 %v281_v22, %v271_v19  ;;  %v291_v19 = vld [vmem:[%s4039_s6 + $0xe8] sm:$0xff] }
 0x16a   : > { %5701 = vst [vmem:[#allocation19_spill] sm:$0xff] %v4378_v58  ;;  %985 = vperm.xlu1 %3590, %v763_v43   ;;  %v786_v43 = vld [vmem:[%s5666_s3 + $0x130] sm:$0xff]  ;;  %v301_v22 = vld [vmem:[%s4039_s6 + $0x138] sm:$0xff]  ;;  %v290_v58 = vld [vmem:[%s4039_s6 + $0xe0] sm:$0xff] }
 0x16c   : > { %v4400_v37 = vpop.trf.xlu1 }
 0x16d   : > { %1080 = vperm.xlu0 %3589, %v782_v1  }
 0x16e   : > { %995 = vperm.xlu1 %3590, %v765_v2   ;;  %v270_v2 = vld [vmem:[%s4039_s6 + $0x40] sm:$0xff] }
 0x170   : > { %673 = vmatpush1.bf16.xpose.msra.mxu0 %v478_v9  ;;  %v418_v9 = vld [vmem:[%s4039_s6 + $0x4e0] sm:$0xff]  ;;  %v4410_v1 = vpop.trf.xlu1 }
 0x171   : > { %674 = vmatprep.subr.bf16.mxu0 %v489_v14  ;;  %v4390_v14 = vpop.trf.xlu0  ;;  %v498_v34 = vpack.c.bf16 %v418_v9, %v408_v6  ;;  %1090 = vperm.xlu0 %3589, %v784_v27   ;;  %v280_v6 = vld [vmem:[%s4039_s6 + $0x90] sm:$0xff]  ;;  %v4414_v9 = vld [vmem:[#allocation5 + $0x20] sm:$0xff] }
 0x172   : > { %5702 = vst [vmem:[#allocation20_spill] sm:$0xff] %v4390_v14  ;;  %1005 = vperm.xlu1 %3590, %v767_v31   ;;  %v788_v27 = vld [vmem:[%s5666_s3 + $0x140] sm:$0xff]  ;;  %v3122_v31 = vcombine.low %v4231_v11, %v4231_v11  ;;  %v441_v14 = vpack.c.bf16 %v301_v22, %v291_v19  ;;  %v790_v11 = vld [vmem:[%s5666_s3 + $0x150] sm:$0xff]  ;;  %v311_v22 = vld [vmem:[%s4039_s6 + $0x188] sm:$0xff] }
 0x173   : > { %v300_v19 = vld [vmem:[%s4039_s6 + $0x130] sm:$0xff] }
 0x175   : > { %1100 = vperm.xlu0 %3589, %v786_v43   ;;  %v3125_v43 = vcombine.high %v4414_v9, %v4414_v9 }
 0x178   : > { %675 = vmatpush1.bf16.xpose.msra.mxu0 %v488_v47  ;;  %v4405_v47 = vpop.trf.xlu0 }
 0x179   : > { %676 = vmatprep.subr.bf16.mxu0 %v499_v55  ;;  %5703 = vst [vmem:[#allocation21_spill] sm:$0xff] %v4405_v47  ;;  %v769_v55 = vld [vmem:[%s5666_s3 + $0xa8] sm:$0xff]  ;;  %v4428_v47 = vpop.trf.xlu1  ;;  %1110 = vperm.xlu0 %3589, %v788_v27   ;;  %v321_v27 = vld [vmem:[%s4039_s6 + $0x1d8] sm:$0xff] }
 0x17a   : > { %1015 = vperm.xlu1 %3590, %v769_v55  }
 0x17c   : > { %v4430_v55 = vpop.trf.xlu0 }
 0x17d   : > { %5704 = vst [vmem:[#allocation22_spill] sm:$0xff] %v4430_v55  ;;  %1120 = vperm.xlu0 %3589, %v790_v11   ;;  %v451_v11 = vpack.c.bf16 %v321_v27, %v311_v22  ;;  %v794_v55 = vld [vmem:[%s5666_s3 + $0x170] sm:$0xff]  ;;  %v341_v22 = vld [vmem:[%s4039_s6 + $0x278] sm:$0xff]  ;;  %v796_v27 = vld [vmem:[%s5666_s3 + $0x180] sm:$0xff] }
 0x180   : > { %677 = vmatpush1.bf16.xpose.msra.mxu0 %v498_v34  ;;  %v771_v34 = vld [vmem:[%s5666_s3 + $0xb8] sm:$0xff] }
 0x181   : > { %702 = vmatprep.subr.bf16.mxu0 %v431_v39  ;;  %v430_v39 = vpack.c.bf16 %v280_v6, %v270_v2  ;;  %1025 = vperm.xlu1 %3590, %v771_v34   ;;  %v773_v2 = vld [vmem:[%s5666_s3 + $0xc8] sm:$0xff]  ;;  %v4438_v6 = vpop.trf.xlu1  ;;  %v4447_v34 = vpop.trf.xlu0 }
 0x182   : > { %5705 = vst [vmem:[#allocation23_spill] sm:$0xff] %v4447_v34 }
 0x185   : > { %1035 = vperm.xlu1 %3590, %v773_v2   ;;  %v777_v2 = vld [vmem:[%s5666_s3 + $0xe8] sm:$0xff] }
 0x187   : > { %695 = vmatmul.mubr.bf16.vlgmr.msra.gmra.mrb[0].mxu0 %v3122_v31  ;;  %v792_v31 = vld [vmem:[%s5666_s3 + $0x160] sm:$0xff] }
 0x188   : > { %703 = vmatpush1.bf16.xpose.msra.mxu0 %v430_v39  ;;  %734 = vmatprep.mubr.bf16.mxu0 %v3125_v43  ;;  %v775_v39 = vld [vmem:[%s5666_s3 + $0xd8] sm:$0xff]  ;;  %v4452_v43 = vpop.trf.xlu1 }
 0x189   : > { %704 = vmatprep.subr.bf16.mxu0 %v441_v14  ;;  %v440_v14 = vpack.c.bf16 %v300_v19, %v290_v58  ;;  %1130 = vperm.xlu0 %3589, %v792_v31   ;;  %v4464_v58 = vpop.trf.xlu0  ;;  %v331_v19 = vld [vmem:[%s4039_s6 + $0x228] sm:$0xff]  ;;  %v779_v31 = vld [vmem:[%s5666_s3 + $0xf8] sm:$0xff] }
 0x18a   : > { %1045 = vperm.xlu1 %3590, %v775_v39   ;;  %5706 = vst [vmem:[#allocation24_spill] sm:$0xff] %v4464_v58  ;;  %v450_v39 = vpack.c.bf16 %v320_v16, %v310_v32  ;;  %v330_v16 = vld [vmem:[%s4039_s6 + $0x220] sm:$0xff]  ;;  %v340_v32 = vld [vmem:[%s4039_s6 + $0x270] sm:$0xff] }
 0x18c   : > { %v4460_v34 = vpop.trf.xlu1 }
 0x18d   : > { %1140 = vperm.xlu0 %3589, %v794_v55   ;;  %v461_v55 = vpack.c.bf16 %v341_v22, %v331_v19  ;;  %v4479_v58 = vpop.trf.xlu0  ;;  %v351_v19 = vld [vmem:[%s4039_s6 + $0x2c8] sm:$0xff]  ;;  %v361_v22 = vld [vmem:[%s4039_s6 + $0x318] sm:$0xff] }
 0x18e   : > { %1055 = vperm.xlu1 %3590, %v777_v2   ;;  %5708 = vst [vmem:[#allocation26_spill] sm:$0xff] %v4479_v58  ;;  %v781_v2 = vld [vmem:[%s5666_s3 + $0x108] sm:$0xff]  ;;  %v471_v58 = vpack.c.bf16 %v361_v22, %v351_v19  ;;  %v381_v22 = vld [vmem:[%s4039_s6 + $0x3b8] sm:$0xff] }
 0x18f   : > { %v371_v19 = vld [vmem:[%s4039_s6 + $0x368] sm:$0xff] }
 0x190   : > { %705 = vmatpush1.bf16.xpose.msra.mxu0 %v440_v14  ;;  %v4474_v14 = vpop.trf.xlu1 }
 0x191   : > { %706 = vmatprep.subr.bf16.mxu0 %v451_v11  ;;  %5707 = vst [vmem:[#allocation25_spill] sm:$0xff] %v4474_v14  ;;  %1150 = vperm.xlu0 %3589, %v796_v27   ;;  %v798_v11 = vld [vmem:[%s5666_s3 + $0x190] sm:$0xff]  ;;  %v800_v27 = vld [vmem:[%s5666_s3 + $0x1a0] sm:$0xff] }
 0x192   : > { %1065 = vperm.xlu1 %3590, %v779_v31   ;;  %v783_v31 = vld [vmem:[%s5666_s3 + $0x118] sm:$0xff] }
 0x194   : > { %v4484_v59 = vpop.trf.xlu1 }
 0x195   : > { %5709 = vst [vmem:[#allocation27_spill] sm:$0xff] %v4484_v59  ;;  %1160 = vperm.xlu0 %3589, %v798_v11   ;;  %v4498_v11 = vpop.trf.xlu0  ;;  %v802_v59 = vld [vmem:[%s5666_s3 + $0x1b0] sm:$0xff] }
 0x196   : > { %1075 = vperm.xlu1 %3590, %v781_v2   ;;  %5711 = vst [vmem:[#allocation29_spill] sm:$0xff] %v4498_v11  ;;  %v785_v2 = vld [vmem:[%s5666_s3 + $0x128] sm:$0xff] }
 0x198   : > { %707 = vmatpush1.bf16.xpose.msra.mxu0 %v450_v39  ;;  %v460_v39 = vpack.c.bf16 %v340_v32, %v330_v16  ;;  %v350_v16 = vld [vmem:[%s4039_s6 + $0x2c0] sm:$0xff]  ;;  %v360_v32 = vld [vmem:[%s4039_s6 + $0x310] sm:$0xff] }
 0x199   : > { %708 = vmatprep.subr.bf16.mxu0 %v461_v55  ;;  %v4496_v55 = vpop.trf.xlu1  ;;  %1170 = vperm.xlu0 %3589, %v800_v27   ;;  %v803_v27 = vld [vmem:[%s5666_s3 + $0x1b8] sm:$0xff] }
 0x19a   : > { %5710 = vst [vmem:[#allocation28_spill] sm:$0xff] %v4496_v55  ;;  %1085 = vperm.xlu1 %3590, %v783_v31   ;;  %v4515_v31 = vpop.trf.xlu0  ;;  %v370_v55 = vld [vmem:[%s4039_s6 + $0x360] sm:$0xff] }
 0x19b   : > { %5713 = vst [vmem:[#allocation31_spill] sm:$0xff] %v4515_v31 }
 0x19d   : > { %v4506_v14 = vpop.trf.xlu1  ;;  %1180 = vperm.xlu0 %3589, %v802_v59   ;;  %v481_v59 = vpack.c.bf16 %v381_v22, %v371_v19  ;;  %v401_v19 = vld [vmem:[%s4039_s6 + $0x458] sm:$0xff] }
 0x19e   : > { %5712 = vst [vmem:[#allocation30_spill] sm:$0xff] %v4506_v14  ;;  %1095 = vperm.xlu1 %3590, %v785_v2   ;;  %v805_v14 = vld [vmem:[%s5666_s3 + $0x1c8] sm:$0xff]  ;;  %v807_v22 = vld [vmem:[%s5666_s3 + $0x1d8] sm:$0xff] }
 0x19f   : > { %v789_v2 = vld [vmem:[%s5666_s3 + $0x148] sm:$0xff] }
 0x1a0   : > { %709 = vmatpush1.bf16.xpose.msra.mxu0 %v460_v39  ;;  %v787_v39 = vld [vmem:[%s5666_s3 + $0x138] sm:$0xff] }
 0x1a1   : > { %710 = vmatprep.subr.bf16.mxu0 %v471_v58  ;;  %v470_v58 = vpack.c.bf16 %v360_v32, %v350_v16  ;;  %v4520_v11 = vpop.trf.xlu1  ;;  %1185 = vperm.xlu0 %3589, %v803_v27   ;;  %v4532_v16 = vpop.trf.xlu0  ;;  %v391_v32 = vld [vmem:[%s4039_s6 + $0x408] sm:$0xff]  ;;  %v791_v27 = vld [vmem:[%s5666_s3 + $0x158] sm:$0xff] }
 0x1a2   : > { %5714 = vst [vmem:[#allocation32_spill] sm:$0xff] %v4520_v11  ;;  %1105 = vperm.xlu1 %3590, %v787_v39   ;;  %5716 = vst [vmem:[#allocation34_spill] sm:$0xff] %v4532_v16  ;;  %v480_v39 = vpack.c.bf16 %v380_v46, %v370_v55  ;;  %v400_v11 = vld [vmem:[%s4039_s6 + $0x450] sm:$0xff]  ;;  %v411_v46 = vld [vmem:[%s4039_s6 + $0x4a8] sm:$0xff] }
 0x1a3   : > { %v421_v55 = vld [vmem:[%s4039_s6 + $0x4f8] sm:$0xff] }
 0x1a5   : > { %v4528_v31 = vpop.trf.xlu1  ;;  %1195 = vperm.xlu0 %3589, %v805_v14   ;;  %v809_v14 = vld [vmem:[%s5666_s3 + $0x1e8] sm:$0xff]  ;;  %v4547_v16 = vpop.trf.xlu0 }
 0x1a6   : > { %5715 = vst [vmem:[#allocation33_spill] sm:$0xff] %v4528_v31  ;;  %1115 = vperm.xlu1 %3590, %v789_v2   ;;  %5718 = vst [vmem:[#allocation36_spill] sm:$0xff] %v4547_v16  ;;  %v793_v2 = vld [vmem:[%s5666_s3 + $0x168] sm:$0xff]  ;;  %v390_v31 = vld [vmem:[%s4039_s6 + $0x400] sm:$0xff] }
 0x1a7   : > { %v410_v16 = vld [vmem:[%s4039_s6 + $0x4a0] sm:$0xff] }
 0x1a8   : > { %711 = vmatpush1.bf16.xpose.msra.mxu0 %v470_v58  ;;  %v491_v58 = vpack.c.bf16 %v401_v19, %v391_v32  ;;  %v811_v32 = vld [vmem:[%s5666_s3 + $0x1f8] sm:$0xff] }
 0x1a9   : > { %712 = vmatprep.subr.bf16.mxu0 %v481_v59  ;;  %1205 = vperm.xlu0 %3589, %v807_v22   ;;  %v4545_v59 = vpop.trf.xlu1  ;;  %v795_v19 = vld [vmem:[%s5666_s3 + $0x178] sm:$0xff]  ;;  %v490_v22 = vpack.c.bf16 %v400_v11, %v390_v31  ;;  %v814_v11 = vld [vmem:[%s5666_s3 + $0x210] sm:$0xff] }
 0x1aa   : > { %1125 = vperm.xlu1 %3590, %v791_v27   ;;  %5717 = vst [vmem:[#allocation35_spill] sm:$0xff] %v4545_v59  ;;  %v420_v59 = vld [vmem:[%s4039_s6 + $0x4f0] sm:$0xff] }
 0x1ad   : > { %1215 = vperm.xlu0 %3589, %v809_v14   ;;  %v4562_v27 = vpop.trf.xlu1  ;;  %v813_v14 = vld [vmem:[%s5666_s3 + $0x208] sm:$0xff] }
 0x1ae   : > { %1135 = vperm.xlu1 %3590, %v793_v2   ;;  %5719 = vst [vmem:[#allocation37_spill] sm:$0xff] %v4562_v27  ;;  %v797_v2 = vld [vmem:[%s5666_s3 + $0x188] sm:$0xff] }
 0x1b0   : > { %713 = vmatpush1.bf16.xpose.msra.mxu0 %v480_v39  ;;  %v501_v39 = vpack.c.bf16 %v421_v55, %v411_v46  ;;  %v799_v55 = vld [vmem:[%s5666_s3 + $0x198] sm:$0xff] }
 0x1b1   : > { %714 = vmatprep.subr.bf16.mxu0 %v491_v58  ;;  %v4564_v58 = vpop.permute.xlu0 %910  ;;  %1225 = vperm.xlu0 %3589, %v811_v32   ;;  %v4577_v31 = vpop.trf.xlu1  ;;  %v500_v32 = vpack.c.bf16 %v420_v59, %v410_v16  ;;  %v816_v16 = vld [vmem:[%s5666_s3 + $0x220] sm:$0xff]  ;;  %v3124_v59 = vcombine.low %v4414_v9, %v4414_v9  ;;  %v818_v9 = vld [vmem:[%s5666_s3 + $0x230] sm:$0xff] }
 0x1b2   : > { %1145 = vperm.xlu1 %3590, %v795_v19   ;;  %5720 = vst [vmem:[#allocation38_spill] sm:$0xff] %v4577_v31  ;;  %v815_v19 = vld [vmem:[%s5666_s3 + $0x218] sm:$0xff] }
 0x1b5   : > { %1235 = vperm.xlu0 %3589, %v813_v14   ;;  %v4579_v46 = vpop.permute.xlu0 %915 }
 0x1b6   : > { %1155 = vperm.xlu1 %3590, %v797_v2   ;;  %v804_v2 = vld [vmem:[%s5666_s3 + $0x1c0] sm:$0xff] }
 0x1b8   : > { %715 = vmatpush1.bf16.xpose.msra.mxu0 %v490_v22  ;;  %v801_v22 = vld [vmem:[%s5666_s3 + $0x1a8] sm:$0xff] }
 0x1b9   : > { %716 = vmatprep.subr.bf16.mxu0 %v501_v39  ;;  %1240 = vperm.xlu0 %3589, %v814_v11   ;;  %v4590_v39 = vpop.trf.xlu1  ;;  %v4592_v14 = vpop.permute.xlu0 %930  ;;  %v817_v11 = vld [vmem:[%s5666_s3 + $0x228] sm:$0xff] }
 0x1ba   : > { %1165 = vperm.xlu1 %3590, %v799_v55   ;;  %5721 = vst [vmem:[#allocation39_spill] sm:$0xff] %v4590_v39  ;;  %5722 = vst [vmem:[#allocation40_spill] sm:$0xff] %v4592_v14 }
 0x1bd   : > { %1245 = vperm.xlu0 %3589, %v815_v19   ;;  %v4605_v55 = vpop.trf.xlu1  ;;  %v806_v19 = vld [vmem:[%s5666_s3 + $0x1d0] sm:$0xff] }
 0x1be   : > { %1175 = vperm.xlu1 %3590, %v801_v22   ;;  %5723 = vst [vmem:[#allocation41_spill] sm:$0xff] %v4605_v55  ;;  %v808_v22 = vld [vmem:[%s5666_s3 + $0x1e0] sm:$0xff] }
 0x1c0   : > { %717 = vmatpush1.bf16.xpose.msra.mxu0 %v500_v32  ;;  %v4607_v32 = vpop.permute.xlu0 %940 }
 0x1c1   : > { %1250 = vperm.xlu0 %3589, %v816_v16   ;;  %5724 = vst [vmem:[#allocation42_spill] sm:$0xff] %v4607_v32  ;;  %v4618_v16 = vpop.trf.xlu1 }
 0x1c2   : > { %1190 = vperm.xlu1 %3590, %v804_v2   ;;  %5725 = vst [vmem:[#allocation43_spill] sm:$0xff] %v4618_v16 }
 0x1c4   : > { %v4620_v2 = vpop.permute.xlu0 %950 }
 0x1c5   : > { %1255 = vperm.xlu0 %3589, %v817_v11   ;;  %5726 = vst [vmem:[#allocation44_spill] sm:$0xff] %v4620_v2  ;;  %v810_v11 = vld [vmem:[%s5666_s3 + $0x1f0] sm:$0xff]  ;;  %v4631_v55 = vpop.trf.xlu1 }
 0x1c6   : > { %1200 = vperm.xlu1 %3590, %v806_v19   ;;  %v820_v19 = vld [vmem:[%s5666_s3 + $0x240] sm:$0xff]  ;;  %5727 = vst [vmem:[#allocation45_spill] sm:$0xff] %v4631_v55 }
 0x1c7   : > { %735 = vmatmul.mubr.bf16.vlgmr.msra.gmra.mrb[0].mxu0 %v3124_v59  ;;  %v819_v59 = vld [vmem:[%s5666_s3 + $0x238] sm:$0xff] }
 0x1c8   : > { %v4633_v16 = vpop.permute.xlu0 %960 }
 0x1c9   : > { %1260 = vperm.xlu0 %3589, %v818_v9   ;;  %5728 = vst [vmem:[#allocation46_spill] sm:$0xff] %v4633_v16  ;;  %v812_v9 = vld [vmem:[%s5666_s3 + $0x200] sm:$0xff]  ;;  %v4644_v39 = vpop.trf.xlu1 }
 0x1ca   : > { %1210 = vperm.xlu1 %3590, %v808_v22   ;;  %v822_v22 = vld [vmem:[%s5666_s3 + $0x250] sm:$0xff]  ;;  %5729 = vst [vmem:[#allocation47_spill] sm:$0xff] %v4644_v39 }
 0x1cc   : > { %v4646_v55 = vpop.permute.xlu0 %970 }
 0x1cd   : > { %1265 = vperm.xlu0 %3589, %v819_v59   ;;  %v821_v59 = vld [vmem:[%s5666_s3 + $0x248] sm:$0xff]  ;;  %5730 = vst [vmem:[#allocation48_spill] sm:$0xff] %v4646_v55  ;;  %v4657_v31 = vpop.trf.xlu1 }
 0x1ce   : > { %1220 = vperm.xlu1 %3590, %v810_v11   ;;  %v824_v11 = vld [vmem:[%s5666_s3 + $0x260] sm:$0xff]  ;;  %5731 = vst [vmem:[#allocation49_spill] sm:$0xff] %v4657_v31 }
 0x1d0   : > { %v4659_v39 = vpop.permute.xlu0 %980 }
 0x1d1   : > { %1270 = vperm.xlu0 %3589, %v820_v19   ;;  %v823_v19 = vld [vmem:[%s5666_s3 + $0x258] sm:$0xff]  ;;  %5732 = vst [vmem:[#allocation50_spill] sm:$0xff] %v4659_v39  ;;  %v4670_v27 = vpop.trf.xlu1 }
 0x1d2   : > { %1230 = vperm.xlu1 %3590, %v812_v9   ;;  %v826_v9 = vld [vmem:[%s5666_s3 + $0x270] sm:$0xff]  ;;  %5733 = vst [vmem:[#allocation51_spill] sm:$0xff] %v4670_v27 }
 0x1d4   : > { %v4672_v31 = vpop.permute.xlu0 %990 }
 0x1d5   : > { %1280 = vperm.xlu0 %3589, %v822_v22   ;;  %v825_v22 = vld [vmem:[%s5666_s3 + $0x268] sm:$0xff]  ;;  %5734 = vst [vmem:[#allocation52_spill] sm:$0xff] %v4672_v31  ;;  %v4683_v55 = vpop.permute.xlu1 %920 }
 0x1d6   : > { %1275 = vperm.xlu1 %3590, %v821_v59   ;;  %v828_v59 = vld [vmem:[%s5666_s3 + $0x280] sm:$0xff] }
 0x1d8   : > { %v4685_v27 = vpop.permute.xlu0 %1000 }
 0x1d9   : > { %1290 = vperm.xlu0 %3589, %v824_v11   ;;  %v827_v11 = vld [vmem:[%s5666_s3 + $0x278] sm:$0xff]  ;;  %5735 = vst [vmem:[#allocation53_spill] sm:$0xff] %v4685_v27  ;;  %v4696_v31 = vpop.permute.xlu1 %925 }
 0x1da   : > { %1285 = vperm.xlu1 %3590, %v823_v19   ;;  %v830_v19 = vld [vmem:[%s5666_s3 + $0x290] sm:$0xff] }
 0x1dc   : > { %v4698_v39 = vpop.permute.xlu0 %1010 }
 0x1dd   : > { %1300 = vperm.xlu0 %3589, %v826_v9   ;;  %v829_v9 = vld [vmem:[%s5666_s3 + $0x288] sm:$0xff]  ;;  %5736 = vst [vmem:[#allocation54_spill] sm:$0xff] %v4698_v39  ;;  %v4709_v27 = vpop.permute.xlu1 %935 }
 0x1de   : > { %1295 = vperm.xlu1 %3590, %v825_v22   ;;  %v832_v22 = vld [vmem:[%s5666_s3 + $0x2a0] sm:$0xff]  ;;  %5737 = vst [vmem:[#allocation55_spill] sm:$0xff] %v4709_v27 }
 0x1e0   : > { %v4711_v2 = vpop.permute.xlu0 %1020 }
 0x1e1   : > { %1310 = vperm.xlu0 %3589, %v828_v59   ;;  %v831_v59 = vld [vmem:[%s5666_s3 + $0x298] sm:$0xff]  ;;  %5738 = vst [vmem:[#allocation56_spill] sm:$0xff] %v4711_v2  ;;  %v4722_v39 = vpop.permute.xlu1 %945  ;;  %v844_v2 = vld [vmem:[%s5666_s3 + $0x300] sm:$0xff] }
 0x1e2   : > { %1305 = vperm.xlu1 %3590, %v827_v11   ;;  %v834_v11 = vld [vmem:[%s5666_s3 + $0x2b0] sm:$0xff]  ;;  %5739 = vst [vmem:[#allocation57_spill] sm:$0xff] %v4722_v39 }
 0x1e4   : > { %v4724_v16 = vpop.permute.xlu0 %1030 }
 0x1e5   : > { %1320 = vperm.xlu0 %3589, %v830_v19   ;;  %v833_v19 = vld [vmem:[%s5666_s3 + $0x2a8] sm:$0xff]  ;;  %5740 = vst [vmem:[#allocation58_spill] sm:$0xff] %v4724_v16 }
 0x1e6   : > { %1315 = vperm.xlu1 %3590, %v829_v9   ;;  %v836_v9 = vld [vmem:[%s5666_s3 + $0x2c0] sm:$0xff] }
 0x1e8   : > { %v4737_v27 = vpop.permute.xlu0 %1040 }
 0x1e9   : > { %1330 = vperm.xlu0 %3589, %v832_v22   ;;  %v835_v22 = vld [vmem:[%s5666_s3 + $0x2b8] sm:$0xff]  ;;  %5742 = vst [vmem:[#allocation60_spill] sm:$0xff] %v4737_v27  ;;  %v850_v27 = vld [vmem:[%s5666_s3 + $0x330] sm:$0xff] }
 0x1ea   : > { %1325 = vperm.xlu1 %3590, %v831_v59   ;;  %v838_v59 = vld [vmem:[%s5666_s3 + $0x2d0] sm:$0xff] }
 0x1ed   : > { %1340 = vperm.xlu0 %3589, %v834_v11   ;;  %v837_v11 = vld [vmem:[%s5666_s3 + $0x2c8] sm:$0xff] }
 0x1ee   : > { %1335 = vperm.xlu1 %3590, %v833_v19   ;;  %v840_v19 = vld [vmem:[%s5666_s3 + $0x2e0] sm:$0xff] }
 0x1f1   : > { %1350 = vperm.xlu0 %3589, %v836_v9   ;;  %v839_v9 = vld [vmem:[%s5666_s3 + $0x2d8] sm:$0xff] }
 0x1f2   : > { %1345 = vperm.xlu1 %3590, %v835_v22   ;;  %v842_v22 = vld [vmem:[%s5666_s3 + $0x2f0] sm:$0xff] }
 0x1f5   : > { %1360 = vperm.xlu0 %3589, %v838_v59   ;;  %v841_v59 = vld [vmem:[%s5666_s3 + $0x2e8] sm:$0xff] }
 0x1f6   : > { %1355 = vperm.xlu1 %3590, %v837_v11   ;;  %v4732_v11 = vpop.permute.xlu1 %955 }
 0x1f7   : > { %5741 = vst [vmem:[#allocation59_spill] sm:$0xff] %v4732_v11  ;;  %v4750_v11 = vpop.permute.xlu0 %1050 }
 0x1f8   : > { %5744 = vst [vmem:[#allocation62_spill] sm:$0xff] %v4750_v11 }
 0x1f9   : > { %1370 = vperm.xlu0 %3589, %v840_v19   ;;  %v843_v19 = vld [vmem:[%s5666_s3 + $0x2f8] sm:$0xff] }
 0x1fa   : > { %1365 = vperm.xlu1 %3590, %v839_v9   ;;  %v846_v9 = vld [vmem:[%s5666_s3 + $0x310] sm:$0xff]  ;;  %v4748_v16 = vpop.permute.xlu1 %965 }
 0x1fb   : > { %5743 = vst [vmem:[#allocation61_spill] sm:$0xff] %v4748_v16  ;;  %v4763_v16 = vpop.permute.xlu0 %1060 }
 0x1fc   : > { %5746 = vst [vmem:[#allocation64_spill] sm:$0xff] %v4763_v16  ;;  %v856_v16 = vld [vmem:[%s5666_s3 + $0x360] sm:$0xff] }
 0x1fd   : > { %1380 = vperm.xlu0 %3589, %v842_v22   ;;  %v845_v22 = vld [vmem:[%s5666_s3 + $0x308] sm:$0xff] }
 0x1fe   : > { %1375 = vperm.xlu1 %3590, %v841_v59   ;;  %v848_v59 = vld [vmem:[%s5666_s3 + $0x320] sm:$0xff] }
 0x201   : > { %1390 = vperm.xlu0 %3589, %v844_v2   ;;  %v847_v2 = vld [vmem:[%s5666_s3 + $0x318] sm:$0xff] }
 0x202   : > { %1385 = vperm.xlu1 %3590, %v843_v19   ;;  %v4758_v19 = vpop.permute.xlu1 %975 }
 0x203   : > { %5745 = vst [vmem:[#allocation63_spill] sm:$0xff] %v4758_v19  ;;  %v4776_v19 = vpop.permute.xlu0 %1070 }
 0x204   : > { %5748 = vst [vmem:[#allocation66_spill] sm:$0xff] %v4776_v19 }
 0x205   : > { %1400 = vperm.xlu0 %3589, %v846_v9   ;;  %v849_v9 = vld [vmem:[%s5666_s3 + $0x328] sm:$0xff] }
 0x206   : > { %1395 = vperm.xlu1 %3590, %v845_v22   ;;  %v852_v22 = vld [vmem:[%s5666_s3 + $0x340] sm:$0xff]  ;;  %v4774_v11 = vpop.permute.xlu1 %985 }
 0x207   : > { %5747 = vst [vmem:[#allocation65_spill] sm:$0xff] %v4774_v11  ;;  %v4789_v11 = vpop.permute.xlu0 %1080 }
 0x208   : > { %5750 = vst [vmem:[#allocation68_spill] sm:$0xff] %v4789_v11  ;;  %v862_v11 = vld [vmem:[%s5666_s3 + $0x390] sm:$0xff] }
 0x209   : > { %1410 = vperm.xlu0 %3589, %v848_v59   ;;  %v851_v59 = vld [vmem:[%s5666_s3 + $0x338] sm:$0xff] }
 0x20a   : > { %1405 = vperm.xlu1 %3590, %v847_v2   ;;  %v854_v2 = vld [vmem:[%s5666_s3 + $0x350] sm:$0xff] }
 0x20b   : > { %v4804_v19 = vpop.permute.xlu0 %1090 }
 0x20c   : > { %5752 = vst [vmem:[#allocation70_spill] sm:$0xff] %v4804_v19 }
 0x20d   : > { %1420 = vperm.xlu0 %3589, %v850_v27   ;;  %v853_v27 = vld [vmem:[%s5666_s3 + $0x348] sm:$0xff] }
 0x20e   : > { %1415 = vperm.xlu1 %3590, %v849_v9   ;;  %v4784_v9 = vpop.permute.xlu1 %995 }
 0x20f   : > { %5749 = vst [vmem:[#allocation67_spill] sm:$0xff] %v4784_v9  ;;  %v4817_v9 = vpop.permute.xlu0 %1100 }
 0x210   : > { %5754 = vst [vmem:[#allocation72_spill] sm:$0xff] %v4817_v9  ;;  %v868_v9 = vld [vmem:[%s5666_s3 + $0x3c0] sm:$0xff] }
 0x211   : > { %1430 = vperm.xlu0 %3589, %v852_v22   ;;  %v855_v22 = vld [vmem:[%s5666_s3 + $0x358] sm:$0xff] }
 0x212   : > { %1425 = vperm.xlu1 %3590, %v851_v59   ;;  %v858_v59 = vld [vmem:[%s5666_s3 + $0x370] sm:$0xff] }
 0x215   : > { %1440 = vperm.xlu0 %3589, %v854_v2   ;;  %v857_v2 = vld [vmem:[%s5666_s3 + $0x368] sm:$0xff] }
 0x216   : > { %1435 = vperm.xlu1 %3590, %v853_v27   ;;  %v4802_v27 = vpop.permute.xlu1 %1005 }
 0x217   : > { %5751 = vst [vmem:[#allocation69_spill] sm:$0xff] %v4802_v27 }
 0x219   : > { %1450 = vperm.xlu0 %3589, %v856_v16   ;;  %v860_v16 = vld [vmem:[%s5666_s3 + $0x380] sm:$0xff] }
 0x21a   : > { %1445 = vperm.xlu1 %3590, %v855_v22   ;;  %v4812_v22 = vpop.permute.xlu1 %1015 }
 0x21b   : > { %5753 = vst [vmem:[#allocation71_spill] sm:$0xff] %v4812_v22  ;;  %v4830_v22 = vpop.permute.xlu0 %1110 }
 0x21c   : > { %5756 = vst [vmem:[#allocation74_spill] sm:$0xff] %v4830_v22 }
 0x21d   : > { %1460 = vperm.xlu0 %3589, %v858_v59   ;;  %v861_v59 = vld [vmem:[%s5666_s3 + $0x388] sm:$0xff] }
 0x21e   : > { %1455 = vperm.xlu1 %3590, %v857_v2   ;;  %v864_v2 = vld [vmem:[%s5666_s3 + $0x3a0] sm:$0xff]  ;;  %v4828_v19 = vpop.permute.xlu1 %1025 }
 0x21f   : > { %5755 = vst [vmem:[#allocation73_spill] sm:$0xff] %v4828_v19  ;;  %v4843_v19 = vpop.permute.xlu0 %1120 }
 0x220   : > { %5758 = vst [vmem:[#allocation76_spill] sm:$0xff] %v4843_v19  ;;  %v874_v19 = vld [vmem:[%s5666_s3 + $0x3f0] sm:$0xff] }
 0x221   : > { %1470 = vperm.xlu0 %3589, %v860_v16   ;;  %v863_v16 = vld [vmem:[%s5666_s3 + $0x398] sm:$0xff] }
 0x222   : > { %1465 = vperm.xlu1 %3590, %v859_v48   ;;  %v866_v48 = vld [vmem:[%s5666_s3 + $0x3b0] sm:$0xff] }
 0x225   : > { %1480 = vperm.xlu0 %3589, %v862_v11   ;;  %v865_v11 = vld [vmem:[%s5666_s3 + $0x3a8] sm:$0xff] }
 0x226   : > { %1475 = vperm.xlu1 %3590, %v861_v59   ;;  %v4838_v59 = vpop.permute.xlu1 %1035 }
 0x227   : > { %5757 = vst [vmem:[#allocation75_spill] sm:$0xff] %v4838_v59  ;;  %v4856_v59 = vpop.permute.xlu0 %1130 }
 0x228   : > { %5760 = vst [vmem:[#allocation78_spill] sm:$0xff] %v4856_v59 }
 0x229   : > { %1490 = vperm.xlu0 %3589, %v864_v2   ;;  %v867_v2 = vld [vmem:[%s5666_s3 + $0x3b8] sm:$0xff] }
 0x22a   : > { %1485 = vperm.xlu1 %3590, %v863_v16   ;;  %v870_v16 = vld [vmem:[%s5666_s3 + $0x3d0] sm:$0xff]  ;;  %v4854_v22 = vpop.permute.xlu1 %1045 }
 0x22b   : > { %5759 = vst [vmem:[#allocation77_spill] sm:$0xff] %v4854_v22  ;;  %v4869_v22 = vpop.permute.xlu0 %1140 }
 0x22c   : > { %5762 = vst [vmem:[#allocation80_spill] sm:$0xff] %v4869_v22  ;;  %v880_v22 = vld [vmem:[%s5666_s3 + $0x420] sm:$0xff] }
 0x22d   : > { %1500 = vperm.xlu0 %3589, %v866_v48   ;;  %v869_v48 = vld [vmem:[%s5666_s3 + $0x3c8] sm:$0xff] }
 0x22e   : > { %1495 = vperm.xlu1 %3590, %v865_v11   ;;  %v872_v11 = vld [vmem:[%s5666_s3 + $0x3e0] sm:$0xff] }
 0x231   : > { %1510 = vperm.xlu0 %3589, %v868_v9   ;;  %v871_v9 = vld [vmem:[%s5666_s3 + $0x3d8] sm:$0xff] }
 0x232   : > { %1505 = vperm.xlu1 %3590, %v867_v2   ;;  %v4864_v2 = vpop.permute.xlu1 %1055 }
 0x233   : > { %5761 = vst [vmem:[#allocation79_spill] sm:$0xff] %v4864_v2  ;;  %v4882_v2 = vpop.permute.xlu0 %1150 }
 0x234   : > { %5764 = vst [vmem:[#allocation82_spill] sm:$0xff] %v4882_v2 }
 0x235   : > { %1520 = vperm.xlu0 %3589, %v870_v16   ;;  %v873_v16 = vld [vmem:[%s5666_s3 + $0x3e8] sm:$0xff] }
 0x236   : > { %1515 = vperm.xlu1 %3590, %v869_v48   ;;  %v876_v48 = vld [vmem:[%s5666_s3 + $0x400] sm:$0xff]  ;;  %v4880_v59 = vpop.permute.xlu1 %1065 }
 0x237   : > { %5763 = vst [vmem:[#allocation81_spill] sm:$0xff] %v4880_v59  ;;  %v4895_v59 = vpop.permute.xlu0 %1160 }
 0x238   : > { %5766 = vst [vmem:[#allocation84_spill] sm:$0xff] %v4895_v59  ;;  %v886_v59 = vld [vmem:[%s5666_s3 + $0x450] sm:$0xff] }
 0x239   : > { %1530 = vperm.xlu0 %3589, %v872_v11   ;;  %v875_v11 = vld [vmem:[%s5666_s3 + $0x3f8] sm:$0xff] }
 0x23a   : > { %1525 = vperm.xlu1 %3590, %v871_v9   ;;  %v878_v9 = vld [vmem:[%s5666_s3 + $0x410] sm:$0xff] }
 0x23d   : > { %1540 = vperm.xlu0 %3589, %v874_v19   ;;  %v877_v19 = vld [vmem:[%s5666_s3 + $0x408] sm:$0xff] }
 0x23e   : > { %1535 = vperm.xlu1 %3590, %v873_v16   ;;  %v4890_v16 = vpop.permute.xlu1 %1075 }
 0x23f   : > { %5765 = vst [vmem:[#allocation83_spill] sm:$0xff] %v4890_v16  ;;  %v4908_v16 = vpop.permute.xlu0 %1170 }
 0x240   : > { %5768 = vst [vmem:[#allocation86_spill] sm:$0xff] %v4908_v16 }
 0x241   : > { %1550 = vperm.xlu0 %3589, %v876_v48   ;;  %v879_v48 = vld [vmem:[%s5666_s3 + $0x418] sm:$0xff] }
 0x242   : > { %1545 = vperm.xlu1 %3590, %v875_v11   ;;  %v882_v11 = vld [vmem:[%s5666_s3 + $0x430] sm:$0xff]  ;;  %v4906_v2 = vpop.permute.xlu1 %1085 }
 0x243   : > { %5767 = vst [vmem:[#allocation85_spill] sm:$0xff] %v4906_v2  ;;  %v4921_v2 = vpop.permute.xlu0 %1180 }
 0x244   : > { %5770 = vst [vmem:[#allocation88_spill] sm:$0xff] %v4921_v2  ;;  %v892_v2 = vld [vmem:[%s5666_s3 + $0x480] sm:$0xff] }
 0x245   : > { %1560 = vperm.xlu0 %3589, %v878_v9   ;;  %v881_v9 = vld [vmem:[%s5666_s3 + $0x428] sm:$0xff] }
 0x246   : > { %1555 = vperm.xlu1 %3590, %v877_v19   ;;  %v884_v19 = vld [vmem:[%s5666_s3 + $0x440] sm:$0xff] }
 0x249   : > { %1570 = vperm.xlu0 %3589, %v880_v22   ;;  %v883_v22 = vld [vmem:[%s5666_s3 + $0x438] sm:$0xff] }
 0x24a   : > { %1565 = vperm.xlu1 %3590, %v879_v48   ;;  %v4916_v48 = vpop.permute.xlu1 %1095 }
 0x24b   : > { %5769 = vst [vmem:[#allocation87_spill] sm:$0xff] %v4916_v48  ;;  %v4934_v48 = vpop.permute.xlu0 %1185 }
 0x24c   : > { %5772 = vst [vmem:[#allocation90_spill] sm:$0xff] %v4934_v48 }
 0x24d   : > { %1580 = vperm.xlu0 %3589, %v882_v11   ;;  %v885_v11 = vld [vmem:[%s5666_s3 + $0x448] sm:$0xff] }
 0x24e   : > { %1575 = vperm.xlu1 %3590, %v881_v9   ;;  %v888_v9 = vld [vmem:[%s5666_s3 + $0x460] sm:$0xff]  ;;  %v4932_v16 = vpop.permute.xlu1 %1105 }
 0x24f   : > { %5771 = vst [vmem:[#allocation89_spill] sm:$0xff] %v4932_v16  ;;  %v4947_v16 = vpop.permute.xlu0 %1195 }
 0x250   : > { %5774 = vst [vmem:[#allocation92_spill] sm:$0xff] %v4947_v16  ;;  %v898_v16 = vld [vmem:[%s5666_s3 + $0x4b0] sm:$0xff] }
 0x251   : > { %1590 = vperm.xlu0 %3589, %v884_v19   ;;  %v887_v19 = vld [vmem:[%s5666_s3 + $0x458] sm:$0xff] }
 0x252   : > { %1585 = vperm.xlu1 %3590, %v883_v22   ;;  %v890_v22 = vld [vmem:[%s5666_s3 + $0x470] sm:$0xff] }
 0x255   : > { %1600 = vperm.xlu0 %3589, %v886_v59   ;;  %v889_v59 = vld [vmem:[%s5666_s3 + $0x468] sm:$0xff] }
 0x256   : > { %1595 = vperm.xlu1 %3590, %v885_v11   ;;  %v4942_v11 = vpop.permute.xlu1 %1115 }
 0x257   : > { %5773 = vst [vmem:[#allocation91_spill] sm:$0xff] %v4942_v11  ;;  %v4960_v11 = vpop.permute.xlu0 %1205 }
 0x258   : > { %5776 = vst [vmem:[#allocation94_spill] sm:$0xff] %v4960_v11 }
 0x259   : > { %1610 = vperm.xlu0 %3589, %v888_v9   ;;  %v891_v9 = vld [vmem:[%s5666_s3 + $0x478] sm:$0xff] }
 0x25a   : > { %1605 = vperm.xlu1 %3590, %v887_v19   ;;  %v894_v19 = vld [vmem:[%s5666_s3 + $0x490] sm:$0xff]  ;;  %v4958_v48 = vpop.permute.xlu1 %1125 }
 0x25b   : > { %5775 = vst [vmem:[#allocation93_spill] sm:$0xff] %v4958_v48  ;;  %v4973_v48 = vpop.permute.xlu0 %1215 }
 0x25c   : > { %5778 = vst [vmem:[#allocation96_spill] sm:$0xff] %v4973_v48  ;;  %v904_v48 = vld [vmem:[%s5666_s3 + $0x4e0] sm:$0xff] }
 0x25d   : > { %1620 = vperm.xlu0 %3589, %v890_v22   ;;  %v893_v22 = vld [vmem:[%s5666_s3 + $0x488] sm:$0xff] }
 0x25e   : > { %1615 = vperm.xlu1 %3590, %v889_v59   ;;  %v896_v59 = vld [vmem:[%s5666_s3 + $0x4a0] sm:$0xff] }
 0x261   : > { %1630 = vperm.xlu0 %3589, %v892_v2   ;;  %v895_v2 = vld [vmem:[%s5666_s3 + $0x498] sm:$0xff] }
 0x262   : > { %1625 = vperm.xlu1 %3590, %v891_v9   ;;  %v4968_v9 = vpop.permute.xlu1 %1135 }
 0x263   : > { %5777 = vst [vmem:[#allocation95_spill] sm:$0xff] %v4968_v9  ;;  %v4986_v9 = vpop.permute.xlu0 %1225 }
 0x264   : > { %5780 = vst [vmem:[#allocation98_spill] sm:$0xff] %v4986_v9 }
 0x265   : > { %1640 = vperm.xlu0 %3589, %v894_v19   ;;  %v897_v19 = vld [vmem:[%s5666_s3 + $0x4a8] sm:$0xff] }
 0x266   : > { %1635 = vperm.xlu1 %3590, %v893_v22   ;;  %v900_v22 = vld [vmem:[%s5666_s3 + $0x4c0] sm:$0xff]  ;;  %v4984_v11 = vpop.permute.xlu1 %1145 }
 0x267   : > { %5779 = vst [vmem:[#allocation97_spill] sm:$0xff] %v4984_v11  ;;  %v4999_v11 = vpop.permute.xlu0 %1235 }
 0x268   : > { %5782 = vst [vmem:[#allocation100_spill] sm:$0xff] %v4999_v11 }
 0x269   : > { %1650 = vperm.xlu0 %3589, %v896_v59   ;;  %v899_v59 = vld [vmem:[%s5666_s3 + $0x4b8] sm:$0xff] }
 0x26a   : > { %1645 = vperm.xlu1 %3590, %v895_v2   ;;  %v902_v2 = vld [vmem:[%s5666_s3 + $0x4d0] sm:$0xff] }
 0x26d   : > { %1660 = vperm.xlu0 %3589, %v898_v16   ;;  %v901_v16 = vld [vmem:[%s5666_s3 + $0x4c8] sm:$0xff] }
 0x26e   : > { %1655 = vperm.xlu1 %3590, %v897_v19   ;;  %v4994_v19 = vpop.permute.xlu1 %1155 }
 0x26f   : > { %5781 = vst [vmem:[#allocation99_spill] sm:$0xff] %v4994_v19  ;;  %v5012_v19 = vpop.permute.xlu0 %1240 }
 0x271   : > { %1670 = vperm.xlu0 %3589, %v900_v22   ;;  %v903_v22 = vld [vmem:[%s5666_s3 + $0x4d8] sm:$0xff] }
 0x272   : > { %1665 = vperm.xlu1 %3590, %v899_v59   ;;  %v906_v59 = vld [vmem:[%s5666_s3 + $0x4f0] sm:$0xff]  ;;  %v5010_v9 = vpop.permute.xlu1 %1165 }
 0x275   : > { %1680 = vperm.xlu0 %3589, %v902_v2   ;;  %v905_v2 = vld [vmem:[%s5666_s3 + $0x4e8] sm:$0xff] }
 0x276   : > { %1675 = vperm.xlu1 %3590, %v901_v16   ;;  %v907_v16 = vld [vmem:[%s5666_s3 + $0x4f8] sm:$0xff] }
 0x279   : > { %1690 = vperm.xlu0 %3589, %v904_v48   ;;  %v5017_v48 = vpop.permute.xlu1 %1175 }
 0x27a   : > { %1685 = vperm.xlu1 %3590, %v903_v22  }
 0x27d   : > { %1700 = vperm.xlu0 %3589, %v906_v59  }
 0x27e   : > { %1695 = vperm.xlu1 %3590, %v905_v2   ;;  %v5807_v2 = vld [vmem:[#allocation33_spill] sm:$0xff] }
 0x282   : > { %1705 = vperm.xlu1 %3590, %v907_v16  }
 0x29a   : > { %v736_v11 = vpop.f32.mrb[0].mxu0 }
 0x29b   : > { %v747_v22 = vpack.c.bf16 %v736_v11, %v736_v11  ;;  %v738_v27 = vpop.f32.mrb[1].mxu0  ;;  %v5806_v11 = vld [vmem:[#allocation63_spill] sm:$0xff] }
 0x29c   : > { %v739_v39 = vpop.f32.mrb[2].mxu0 }
 0x29d   : > { %v740_v14 = vpop.f32.mrb[3].mxu0  ;;  %3478 = vmatprep.subr.msk.bf16.mxu1 %vm2144_vm1, %v747_v22  ;;  %v2146_v32 = vsel %vm2144_vm1, %v747_v22, 0  ;;  %v5808_v22 = vld [vmem:[#allocation35_spill] sm:$0xff] }
 0x29e   : > { %3301 = vmatpush3.bf16.msra.mxu1 %v2146_v32 }
 0x2a1   : > { %3303 = vmatmul.mubr.msk.bf16.vlgmr.msra.gmra.mrb[0].mxu1 %vm1903_vm0, %v4208_v56  ;;  %v5789_v56 = vld [vmem:[#allocation21_spill] sm:$0xff] }
 0x2a2   : > { %3306 = vmatprep.mubr.msk.bf16.mxu1 %vm1903_vm0, %v4219_v63 }
 0x2a9   : > { %3307 = vmatmul.mubr.msk.bf16.gmra.mrb[4].mxu1 %vm1903_vm0, %v4228_v8 }
 0x2aa   : > { %3310 = vmatprep.mubr.msk.bf16.mxu1 %vm1903_vm0, %v4244_v21  ;;  %v5792_v21 = vld [vmem:[#allocation40_spill] sm:$0xff] }
 0x2b1   : > { %3311 = vmatmul.mubr.msk.bf16.gmra.mrb[8].mxu1 %vm1903_vm0, %v4251_v53 }
 0x2b2   : > { %3314 = vmatprep.mubr.msk.bf16.mxu1 %vm1903_vm0, %v4262_v35 }
 0x2b9   : > { %3315 = vmatmul.mubr.msk.bf16.gmra.mrb[12].mxu1 %vm1903_vm0, %v4269_v40  ;;  %v5794_v40 = vld [vmem:[#allocation55_spill] sm:$0xff] }
 0x2ba   : > { %3318 = vmatprep.mubr.msk.bf16.mxu1 %vm1903_vm0, %v4133_v54  ;;  %v5783_v54 = vld [vmem:[#allocation15_spill] sm:$0xff] }
 0x2c1   : > { %3319 = vmatmul.mubr.msk.bf16.gmra.mrb[16].mxu1 %vm1903_vm0, %v4141_v62  ;;  %v5784_v62 = vld [vmem:[#allocation16_spill] sm:$0xff] }
 0x2c2   : > { %3322 = vmatprep.mubr.msk.bf16.mxu1 %vm1903_vm0, %v4147_v60  ;;  %v5785_v60 = vld [vmem:[#allocation17_spill] sm:$0xff] }
 0x2c9   : > { %3323 = vmatmul.mubr.msk.bf16.gmra.mrb[20].mxu1 %vm1903_vm0, %v4153_v7  ;;  %v5786_v7 = vld [vmem:[#allocation18_spill] sm:$0xff] }
 0x2ca   : > { %3326 = vmatprep.mubr.msk.bf16.mxu1 %vm1903_vm0, %v4157_v10  ;;  %v5787_v10 = vld [vmem:[#allocation19_spill] sm:$0xff] }
 0x2d1   : > { %3327 = vmatmul.mubr.msk.bf16.gmra.mrb[24].mxu1 %vm1903_vm0, %v4161_v15  ;;  %v5788_v15 = vld [vmem:[#allocation20_spill] sm:$0xff] }
 0x2d2   : > { %3330 = vmatprep.mubr.msk.bf16.mxu1 %vm1903_vm0, %v4168_v20 }
 0x2d9   : > { %3331 = vmatmul.mubr.msk.bf16.gmra.mrb[28].mxu1 %vm1903_vm0, %v4172_v25 }
 0x2da   : > { %3334 = vmatprep.mubr.msk.bf16.mxu1 %vm1903_vm0, %v4176_v28 }
 0x2e1   : > { %3335 = vmatmul.mubr.msk.bf16.gmra.mrb[32].mxu1 %vm1903_vm0, %v4180_v33 }
 0x2e2   : > { %3338 = vmatprep.mubr.msk.bf16.mxu1 %vm1903_vm0, %v4184_v36 }
 0x2e9   : > { %3339 = vmatmul.mubr.msk.bf16.gmra.mrb[36].mxu1 %vm1903_vm0, %v4188_v41 }
 0x2ea   : > { %3342 = vmatprep.mubr.msk.bf16.mxu1 %vm1903_vm0, %v4195_v45 }
 0x2f1   : > { %3343 = vmatmul.mubr.msk.bf16.gmra.mrb[40].mxu1 %vm1903_vm0, %v4204_v52 }
 0x2f2   : > { %3346 = vmatprep.mubr.msk.bf16.mxu1 %vm1903_vm0, %v4215_v61  ;;  %v5790_v61 = vld [vmem:[#allocation25_spill] sm:$0xff] }
 0x2f9   : > { %3347 = vmatmul.mubr.msk.bf16.gmra.mrb[44].mxu1 %vm1903_vm0, %v4224_v5  ;;  %v5791_v5 = vld [vmem:[#allocation42_spill] sm:$0xff] }
 0x2fa   : > { %3350 = vmatprep.mubr.msk.bf16.mxu1 %vm1903_vm0, %v4280_v51  ;;  %v5795_v51 = vld [vmem:[#allocation27_spill] sm:$0xff] }
 0x301   : > { %3351 = vmatmul.mubr.msk.bf16.gmra.mrb[48].mxu1 %vm1903_vm0, %v4290_v0 }
 0x302   : > { %3354 = vmatprep.mubr.msk.bf16.mxu1 %vm1903_vm0, %v4304_v17 }
 0x309   : > { %3355 = vmatmul.mubr.msk.bf16.gmra.mrb[52].mxu1 %vm1903_vm0, %v4314_v24  ;;  %v5798_v24 = vld [vmem:[#allocation44_spill] sm:$0xff] }
 0x30a   : > { %3358 = vmatprep.mubr.msk.bf16.mxu1 %vm1903_vm0, %v4328_v42 }
 0x311   : > { %3359 = vmatmul.mubr.msk.bf16.gmra.mrb[56].mxu1 %vm1903_vm0, %v4338_v50  ;;  %v5799_v50 = vld [vmem:[#allocation61_spill] sm:$0xff] }
 0x312   : > { %3362 = vmatprep.mubr.msk.bf16.mxu1 %vm1903_vm0, %v4352_v12 }
 0x319   : > { %3363 = vmatmul.mubr.msk.bf16.gmra.mrb[60].mxu1 %vm1903_vm0, %v4362_v26 }
 0x31a   : > { %3366 = vmatprep.mubr.msk.bf16.mxu1 %vm1903_vm0, %v4236_v13 }
 0x321   : > { %3367 = vmatmul.mubr.msk.bf16.gmra.mrb[64].mxu1 %vm1903_vm0, %v4246_v23 }
 0x322   : > { %3370 = vmatprep.mubr.msk.bf16.mxu1 %vm1903_vm0, %v4255_v29  ;;  %v5793_v29 = vld [vmem:[#allocation57_spill] sm:$0xff] }
 0x329   : > { %3371 = vmatmul.mubr.msk.bf16.gmra.mrb[68].mxu1 %vm1903_vm0, %v4264_v38 }
 0x32a   : > { %3374 = vmatprep.mubr.msk.bf16.mxu1 %vm1903_vm0, %v4273_v44 }
 0x331   : > { %3375 = vmatmul.mubr.msk.bf16.gmra.mrb[72].mxu1 %vm1903_vm0, %v4282_v57  ;;  %v5796_v57 = vld [vmem:[#allocation28_spill] sm:$0xff] }
 0x332   : > { %3378 = vmatprep.mubr.msk.bf16.mxu1 %vm1903_vm0, %v4294_v3  ;;  %v5797_v3 = vld [vmem:[#allocation46_spill] sm:$0xff] }
 0x339   : > { %3379 = vmatmul.mubr.msk.bf16.gmra.mrb[76].mxu1 %vm1903_vm0, %v4306_v18 }
 0x33a   : > { %3382 = vmatprep.mubr.msk.bf16.mxu1 %vm1903_vm0, %v4376_v49  ;;  %v5800_v49 = vld [vmem:[#allocation59_spill] sm:$0xff] }
 0x341   : > { %3383 = vmatmul.mubr.msk.bf16.gmra.mrb[80].mxu1 %vm1903_vm0, %v4386_v4 }
 0x342   : > { %3386 = vmatprep.mubr.msk.bf16.mxu1 %vm1903_vm0, %v4400_v37  ;;  %v5801_v37 = vld [vmem:[#allocation30_spill] sm:$0xff] }
 0x349   : > { %3387 = vmatmul.mubr.msk.bf16.gmra.mrb[84].mxu1 %vm1903_vm0, %v4410_v1  ;;  %v5167_v1 = vpop.permute.xlu0 %1245 }
 0x34a   : > { %3390 = vmatprep.mubr.msk.bf16.mxu1 %vm1903_vm0, %v4428_v47  ;;  %v5802_v47 = vld [vmem:[#allocation32_spill] sm:$0xff] }
 0x34d   : > { %v5180_v16 = vpop.permute.xlu0 %1250 }
 0x351   : > { %3391 = vmatmul.mubr.msk.bf16.gmra.mrb[88].mxu1 %vm1903_vm0, %v4438_v6 }
 0x352   : > { %3394 = vmatprep.mubr.msk.bf16.mxu1 %vm1903_vm0, %v4452_v43 }
 0x359   : > { %3395 = vmatmul.mubr.msk.bf16.gmra.mrb[92].mxu1 %vm1903_vm0, %v4460_v34  ;;  %v5803_v34 = vld [vmem:[#allocation50_spill] sm:$0xff] }
 0x35a   : > { %3398 = vmatprep.mubr.msk.bf16.mxu1 %vm1903_vm0, %v4318_v30 }
 0x361   : > { %3399 = vmatmul.mubr.msk.bf16.gmra.mrb[96].mxu1 %vm1903_vm0, %v5783_v54 }
 0x362   : > { %3402 = vmatprep.mubr.msk.bf16.mxu1 %vm1903_vm0, %v5784_v62 }
 0x369   : > { %3403 = vmatmul.mubr.msk.bf16.gmra.mrb[100].mxu1 %vm1903_vm0, %v5785_v60  ;;  %v5809_v60 = vld [vmem:[#allocation53_spill] sm:$0xff] }
 0x36a   : > { %3406 = vmatprep.mubr.msk.bf16.mxu1 %vm1903_vm0, %v5786_v7 }
 0x371   : > { %3407 = vmatmul.mubr.msk.bf16.gmra.mrb[104].mxu1 %vm1903_vm0, %v5787_v10 }
 0x372   : > { %3410 = vmatprep.mubr.msk.bf16.mxu1 %vm1903_vm0, %v5788_v15  ;;  %v5810_v15 = vld [vmem:[#allocation52_spill] sm:$0xff] }
 0x374   : > { %v3304_v20 = vpop.f32.mrb[0].mxu1 }
 0x375   : > { %v2191_v25 = vadd.f32 %v3304_v20, %v4683_v55  ;;  %v2182_v28 = vpop.f32.mrb[1].mxu1  ;;  %v5805_v55 = vld [vmem:[#allocation65_spill] sm:$0xff] }
 0x376   : > { %v2183_v33 = vadd.f32 %v2182_v28, %v4564_v58  ;;  %v3305_v36 = vpop.f32.mrb[2].mxu1  ;;  %v5811_v28 = vld [vmem:[#allocation69_spill] sm:$0xff] }
 0x377   : > { %2823 = vst [vmem:[%s5131_s7 + $0x10] sm:$0xff] %v2191_v25  ;;  %v2194_v41 = vadd.f32 %v3305_v36, %v4696_v31  ;;  %v2185_v45 = vpop.f32.mrb[3].mxu1  ;;  %v5170_v31 = vpop.permute.xlu1 %1190 }
 0x378   : > { %2821 = vst [vmem:[%s5131_s7] sm:$0xff] %v2183_v33  ;;  %v2186_v52 = vadd.f32 %v2185_v45, %v4579_v46  ;;  %v5804_v46 = vld [vmem:[#allocation48_spill] sm:$0xff]  ;;  %v5812_v45 = vld [vmem:[#allocation67_spill] sm:$0xff] }
 0x379   : > { %2824 = vst [vmem:[%s5131_s7 + $0x18] sm:$0xff] %v2194_v41  ;;  %3411 = vmatmul.mubr.msk.bf16.gmra.mrb[108].mxu1 %vm1903_vm0, %v5789_v56  ;;  %v5191_v41 = vpop.permute.xlu0 %1255  ;;  %v5813_v56 = vld [vmem:[#allocation37_spill] sm:$0xff] }
 0x37a   : > { %2822 = vst [vmem:[%s5131_s7 + $0x8] sm:$0xff] %v2186_v52  ;;  %3414 = vmatprep.mubr.msk.bf16.mxu1 %vm1903_vm0, %v5790_v61 }
 0x37b   : > { %v5185_v54 = vpop.permute.xlu1 %1200 }
 0x37c   : > { %v3308_v63 = vpop.f32.mrb[4].mxu1 }
 0x37d   : > { %v2207_v8 = vadd.f32 %v3308_v63, %v5791_v5  ;;  %v2198_v13 = vpop.f32.mrb[5].mxu1  ;;  %v5814_v63 = vld [vmem:[#allocation22_spill] sm:$0xff] }
 0x37e   : > { %v2199_v23 = vadd.f32 %v2198_v13, %v5792_v21  ;;  %v3309_v53 = vpop.f32.mrb[6].mxu1 }
 0x37f   : > { %2827 = vst [vmem:[%s5131_s7 + $0x30] sm:$0xff] %v2207_v8  ;;  %v2210_v35 = vadd.f32 %v3309_v53, %v5793_v29  ;;  %v2201_v38 = vpop.f32.mrb[7].mxu1  ;;  %v5198_v61 = vpop.permute.xlu1 %1210  ;;  %v5815_v8 = vld [vmem:[#allocation56_spill] sm:$0xff]  ;;  %v5816_v53 = vld [vmem:[#allocation54_spill] sm:$0xff] }
 0x380   : > { %2825 = vst [vmem:[%s5131_s7 + $0x20] sm:$0xff] %v2199_v23  ;;  %v2202_v44 = vadd.f32 %v2201_v38, %v5794_v40  ;;  %v5204_v23 = vpop.permute.xlu0 %1260  ;;  %v5817_v38 = vld [vmem:[#allocation73_spill] sm:$0xff] }
 0x381   : > { %2828 = vst [vmem:[%s5131_s7 + $0x38] sm:$0xff] %v2210_v35  ;;  %3415 = vmatmul.mubr.msk.bf16.gmra.mrb[112].mxu1 %vm1903_vm0, %v5795_v51 }
 0x382   : > { %2826 = vst [vmem:[%s5131_s7 + $0x28] sm:$0xff] %v2202_v44  ;;  %3418 = vmatprep.mubr.msk.bf16.mxu1 %vm1903_vm0, %v5796_v57  ;;  %v5818_v57 = vld [vmem:[#allocation71_spill] sm:$0xff] }
 0x383   : > { %v5209_v51 = vpop.permute.xlu1 %1220 }
 0x384   : > { %v3312_v0 = vpop.f32.mrb[8].mxu1 }
 0x385   : > { %v2223_v17 = vadd.f32 %v3312_v0, %v5797_v3  ;;  %v2214_v18 = vpop.f32.mrb[9].mxu1  ;;  %v5819_v3 = vld [vmem:[#allocation23_spill] sm:$0xff] }
 0x386   : > { %v2215_v30 = vadd.f32 %v2214_v18, %v5798_v24  ;;  %v3313_v42 = vpop.f32.mrb[10].mxu1  ;;  %v5219_v18 = vpop.permute.xlu0 %1265 }
 0x387   : > { %2831 = vst [vmem:[%s5131_s7 + $0x50] sm:$0xff] %v2223_v17  ;;  %v2226_v12 = vadd.f32 %v3313_v42, %v5799_v50  ;;  %v2217_v26 = vpop.f32.mrb[11].mxu1  ;;  %v5820_v17 = vld [vmem:[#allocation24_spill] sm:$0xff] }
 0x388   : > { %2829 = vst [vmem:[%s5131_s7 + $0x40] sm:$0xff] %v2215_v30  ;;  %v2218_v4 = vadd.f32 %v2217_v26, %v5800_v49  ;;  %v5821_v30 = vld [vmem:[#allocation60_spill] sm:$0xff]  ;;  %v5822_v26 = vld [vmem:[#allocation58_spill] sm:$0xff] }
 0x389   : > { %2832 = vst [vmem:[%s5131_s7 + $0x58] sm:$0xff] %v2226_v12  ;;  %3419 = vmatmul.mubr.msk.bf16.gmra.mrb[116].mxu1 %vm1903_vm0, %v5801_v37  ;;  %v5222_v12 = vpop.permute.xlu1 %1230  ;;  %v5823_v37 = vld [vmem:[#allocation77_spill] sm:$0xff] }
 0x38a   : > { %2830 = vst [vmem:[%s5131_s7 + $0x48] sm:$0xff] %v2218_v4  ;;  %3422 = vmatprep.mubr.msk.bf16.mxu1 %vm1903_vm0, %v5802_v47 }
 0x38c   : > { %v3316_v6 = vpop.f32.mrb[12].mxu1 }
 0x38d   : > { %v2239_v43 = vadd.f32 %v3316_v6, %v5803_v34  ;;  %v2230_v58 = vpop.f32.mrb[13].mxu1  ;;  %v5824_v34 = vld [vmem:[#allocation75_spill] sm:$0xff] }
 0x38e   : > { %v2231_v39 = vadd.f32 %v2230_v58, %v5804_v46  ;;  %v3317_v14 = vpop.f32.mrb[14].mxu1  ;;  %v5825_v58 = vld [vmem:[#allocation26_spill] sm:$0xff]  ;;  %v5232_v46 = vpop.permute.xlu0 %1270 }
 0x38f   : > { %2835 = vst [vmem:[%s5131_s7 + $0x70] sm:$0xff] %v2239_v43  ;;  %v2242_v32 = vadd.f32 %v3317_v14, %v5805_v55  ;;  %v2233_v27 = vpop.f32.mrb[15].mxu1  ;;  %v5237_v14 = vpop.permute.xlu1 %1275 }
 0x390   : > { %2833 = vst [vmem:[%s5131_s7 + $0x60] sm:$0xff] %v2231_v39  ;;  %v2234_v59 = vadd.f32 %v2233_v27, %v5806_v11  ;;  %v5826_v39 = vld [vmem:[#allocation29_spill] sm:$0xff] }
 0x391   : > { %2836 = vst [vmem:[%s5131_s7 + $0x78] sm:$0xff] %v2242_v32  ;;  %3423 = vmatmul.mubr.msk.bf16.gmra.mrb[120].mxu1 %vm1903_vm0, %v5807_v2  ;;  %v5827_v32 = vld [vmem:[#allocation64_spill] sm:$0xff] }
 0x392   : > { %2834 = vst [vmem:[%s5131_s7 + $0x68] sm:$0xff] %v2234_v59  ;;  %3426 = vmatprep.mubr.msk.bf16.mxu1 %vm1903_vm0, %v5808_v22  ;;  %v5828_v59 = vld [vmem:[#allocation62_spill] sm:$0xff] }
 0x394   : > { %v3320_v62 = vpop.f32.mrb[16].mxu1 }
 0x395   : > { %v2255_v7 = vadd.f32 %v3320_v62, %v5809_v60  ;;  %v2246_v10 = vpop.f32.mrb[17].mxu1  ;;  %v5829_v62 = vld [vmem:[#allocation81_spill] sm:$0xff] }
 0x396   : > { %v2247_v20 = vadd.f32 %v2246_v10, %v5810_v15  ;;  %v3321_v25 = vpop.f32.mrb[18].mxu1  ;;  %v5243_v10 = vpop.permute.xlu0 %1280  ;;  %v5830_v15 = vld [vmem:[#allocation79_spill] sm:$0xff] }
 0x397   : > { %2839 = vst [vmem:[%s5131_s7 + $0x90] sm:$0xff] %v2255_v7  ;;  %v2258_v33 = vadd.f32 %v3321_v25, %v5811_v28  ;;  %v2249_v36 = vpop.f32.mrb[19].mxu1  ;;  %v5831_v25 = vld [vmem:[#allocation31_spill] sm:$0xff]  ;;  %v5250_v28 = vpop.permute.xlu1 %1285 }
 0x398   : > { %2837 = vst [vmem:[%s5131_s7 + $0x80] sm:$0xff] %v2247_v20  ;;  %v2250_v52 = vadd.f32 %v2249_v36, %v5812_v45  ;;  %v5833_v45 = vld [vmem:[#allocation68_spill] sm:$0xff] }
 0x399   : > { %2840 = vst [vmem:[%s5131_s7 + $0x98] sm:$0xff] %v2258_v33  ;;  %3427 = vmatmul.mubr.msk.bf16.gmra.mrb[124].mxu1 %vm1903_vm0, %v5813_v56  ;;  %v5832_v33 = vld [vmem:[#allocation34_spill] sm:$0xff] }
 0x39a   : > { %2838 = vst [vmem:[%s5131_s7 + $0x88] sm:$0xff] %v2250_v52  ;;  %3430 = vmatprep.mubr.msk.bf16.mxu1 %vm1903_vm0, %v5814_v63  ;;  %v5256_v63 = vpop.permute.xlu0 %1290 }
 0x39c   : > { %v3324_v5 = vpop.f32.mrb[20].mxu1 }
 0x39d   : > { %v2271_v13 = vadd.f32 %v3324_v5, %v5815_v8  ;;  %v2262_v21 = vpop.f32.mrb[21].mxu1  ;;  %v5834_v5 = vld [vmem:[#allocation66_spill] sm:$0xff] }
 0x39e   : > { %v2263_v29 = vadd.f32 %v2262_v21, %v5816_v53  ;;  %v3325_v35 = vpop.f32.mrb[22].mxu1  ;;  %v5835_v21 = vld [vmem:[#allocation85_spill] sm:$0xff] }
 0x39f   : > { %2843 = vst [vmem:[%s5131_s7 + $0xb0] sm:$0xff] %v2271_v13  ;;  %v2274_v40 = vadd.f32 %v3325_v35, %v5817_v38  ;;  %v2265_v44 = vpop.f32.mrb[23].mxu1  ;;  %v5261_v35 = vpop.permute.xlu1 %1295  ;;  %v5836_v38 = vld [vmem:[#allocation83_spill] sm:$0xff] }
 0x3a0   : > { %2841 = vst [vmem:[%s5131_s7 + $0xa0] sm:$0xff] %v2263_v29  ;;  %v2266_v0 = vadd.f32 %v2265_v44, %v5818_v57  ;;  %v5837_v44 = vld [vmem:[#allocation36_spill] sm:$0xff]  ;;  %v5838_v57 = vld [vmem:[#allocation38_spill] sm:$0xff] }
 0x3a1   : > { %2844 = vst [vmem:[%s5131_s7 + $0xb8] sm:$0xff] %v2274_v40  ;;  %3431 = vmatmul.mubr.msk.bf16.gmra.mrb[128].mxu1 %vm1903_vm0, %v5819_v3 }
 0x3a2   : > { %2842 = vst [vmem:[%s5131_s7 + $0xa8] sm:$0xff] %v2266_v0  ;;  %3434 = vmatprep.mubr.msk.bf16.mxu1 %vm1903_vm0, %v5820_v17  ;;  %v5271_v0 = vpop.permute.xlu0 %1300  ;;  %v5839_v17 = vld [vmem:[#allocation72_spill] sm:$0xff] }
 0x3a4   : > { %v3328_v24 = vpop.f32.mrb[24].mxu1 }
 0x3a5   : > { %v2287_v42 = vadd.f32 %v3328_v24, %v5821_v30  ;;  %v2278_v50 = vpop.f32.mrb[25].mxu1 }
 0x3a6   : > { %v2279_v49 = vadd.f32 %v2278_v50, %v5822_v26  ;;  %v3329_v4 = vpop.f32.mrb[26].mxu1  ;;  %v5840_v50 = vld [vmem:[#allocation70_spill] sm:$0xff] }
 0x3a7   : > { %2847 = vst [vmem:[%s5131_s7 + $0xd0] sm:$0xff] %v2287_v42  ;;  %v2290_v47 = vadd.f32 %v3329_v4, %v5823_v37  ;;  %v2281_v6 = vpop.f32.mrb[27].mxu1  ;;  %v5274_v42 = vpop.permute.xlu1 %1305  ;;  %v5841_v4 = vld [vmem:[#allocation89_spill] sm:$0xff] }
 0x3a8   : > { %2845 = vst [vmem:[%s5131_s7 + $0xc0] sm:$0xff] %v2279_v49  ;;  %v2282_v43 = vadd.f32 %v2281_v6, %v5824_v34  ;;  %v5842_v6 = vld [vmem:[#allocation87_spill] sm:$0xff] }
 0x3a9   : > { %2848 = vst [vmem:[%s5131_s7 + $0xd8] sm:$0xff] %v2290_v47  ;;  %3435 = vmatmul.mubr.msk.bf16.gmra.mrb[132].mxu1 %vm1903_vm0, %v5825_v58  ;;  %v5284_v58 = vpop.permute.xlu0 %1310 }
 0x3aa   : > { %2846 = vst [vmem:[%s5131_s7 + $0xc8] sm:$0xff] %v2282_v43  ;;  %3438 = vmatprep.mubr.msk.bf16.mxu1 %vm1903_vm0, %v5826_v39  ;;  %v5843_v43 = vld [vmem:[#allocation39_spill] sm:$0xff]  ;;  %v5844_v39 = vld [vmem:[#allocation41_spill] sm:$0xff] }
 0x3ac   : > { %v3332_v55 = vpop.f32.mrb[28].mxu1 }
 0x3ad   : > { %v2303_v27 = vadd.f32 %v3332_v55, %v5827_v32  ;;  %v2294_v11 = vpop.f32.mrb[29].mxu1  ;;  %v5289_v55 = vpop.permute.xlu1 %1315 }
 0x3ae   : > { %v2295_v2 = vadd.f32 %v2294_v11, %v5828_v59  ;;  %v3333_v22 = vpop.f32.mrb[30].mxu1 }
 0x3af   : > { %2851 = vst [vmem:[%s5131_s7 + $0xf0] sm:$0xff] %v2303_v27  ;;  %v2306_v60 = vadd.f32 %v3333_v22, %v5829_v62  ;;  %v2297_v7 = vpop.f32.mrb[31].mxu1  ;;  %v5845_v27 = vld [vmem:[#allocation76_spill] sm:$0xff] }
 0x3b0   : > { %2849 = vst [vmem:[%s5131_s7 + $0xe0] sm:$0xff] %v2295_v2  ;;  %v2298_v20 = vadd.f32 %v2297_v7, %v5830_v15  ;;  %v5846_v2 = vld [vmem:[#allocation74_spill] sm:$0xff] }
 0x3b1   : > { %2852 = vst [vmem:[%s5131_s7 + $0xf8] sm:$0xff] %v2306_v60  ;;  %3439 = vmatmul.mubr.msk.bf16.gmra.mrb[136].mxu1 %vm1903_vm0, %v5831_v25  ;;  %v5847_v60 = vld [vmem:[#allocation93_spill] sm:$0xff]  ;;  %v5848_v25 = vld [vmem:[#allocation91_spill] sm:$0xff] }
 0x3b2   : > { %2850 = vst [vmem:[%s5131_s7 + $0xe8] sm:$0xff] %v2298_v20  ;;  %3442 = vmatprep.mubr.msk.bf16.mxu1 %vm1903_vm0, %v5832_v33  ;;  %v5295_v20 = vpop.permute.xlu0 %1320 }
 0x3b4   : > { %v3336_v36 = vpop.f32.mrb[32].mxu1 }
 0x3b5   : > { %v2319_v52 = vadd.f32 %v3336_v36, %v5833_v45  ;;  %v2310_v56 = vpop.f32.mrb[33].mxu1  ;;  %v5849_v36 = vld [vmem:[#allocation43_spill] sm:$0xff]  ;;  %v5302_v45 = vpop.permute.xlu1 %1325 }
 0x3b6   : > { %v2311_v8 = vadd.f32 %v2310_v56, %v5834_v5  ;;  %v3337_v13 = vpop.f32.mrb[34].mxu1  ;;  %v5851_v5 = vld [vmem:[#allocation80_spill] sm:$0xff] }
 0x3b7   : > { %2855 = vst [vmem:[%s5131_s7 + $0x110] sm:$0xff] %v2319_v52  ;;  %v2322_v53 = vadd.f32 %v3337_v13, %v5835_v21  ;;  %v2313_v29 = vpop.f32.mrb[35].mxu1  ;;  %v5850_v52 = vld [vmem:[#allocation45_spill] sm:$0xff]  ;;  %v5308_v21 = vpop.permute.xlu0 %1330 }
 0x3b8   : > { %2853 = vst [vmem:[%s5131_s7 + $0x100] sm:$0xff] %v2311_v8  ;;  %v2314_v40 = vadd.f32 %v2313_v29, %v5836_v38 }
 0x3b9   : > { %2856 = vst [vmem:[%s5131_s7 + $0x118] sm:$0xff] %v2322_v53  ;;  %3443 = vmatmul.mubr.msk.bf16.gmra.mrb[140].mxu1 %vm1903_vm0, %v5837_v44  ;;  %v5852_v53 = vld [vmem:[#allocation78_spill] sm:$0xff] }
 0x3ba   : > { %2854 = vst [vmem:[%s5131_s7 + $0x108] sm:$0xff] %v2314_v40  ;;  %3446 = vmatprep.mubr.msk.bf16.mxu1 %vm1903_vm0, %v5838_v57  ;;  %v5853_v40 = vld [vmem:[#allocation97_spill] sm:$0xff] }
 0x3bc   : > { %v3340_v3 = vpop.f32.mrb[36].mxu1 }
 0x3bd   : > { %v2335_v24 = vadd.f32 %v3340_v3, %v5839_v17  ;;  %v2326_v30 = vpop.f32.mrb[37].mxu1  ;;  %v5313_v3 = vpop.permute.xlu1 %1335  ;;  %v5854_v17 = vld [vmem:[#allocation95_spill] sm:$0xff] }
 0x3be   : > { %v2327_v26 = vadd.f32 %v2326_v30, %v5840_v50  ;;  %v3341_v49 = vpop.f32.mrb[38].mxu1  ;;  %v5855_v30 = vld [vmem:[#allocation47_spill] sm:$0xff]  ;;  %v5856_v50 = vld [vmem:[#allocation49_spill] sm:$0xff] }
 0x3bf   : > { %2859 = vst [vmem:[%s5131_s7 + $0x130] sm:$0xff] %v2335_v24  ;;  %v2338_v37 = vadd.f32 %v3341_v49, %v5841_v4  ;;  %v2329_v47 = vpop.f32.mrb[39].mxu1  ;;  %v5857_v4 = vld [vmem:[#allocation84_spill] sm:$0xff] }
 0x3c0   : > { %2857 = vst [vmem:[%s5131_s7 + $0x120] sm:$0xff] %v2327_v26  ;;  %v2330_v34 = vadd.f32 %v2329_v47, %v5842_v6  ;;  %v5323_v26 = vpop.permute.xlu0 %1340 }
 0x3c1   : > { %2860 = vst [vmem:[%s5131_s7 + $0x138] sm:$0xff] %v2338_v37  ;;  %3447 = vmatmul.mubr.msk.bf16.gmra.mrb[144].mxu1 %vm1903_vm0, %v5843_v43  ;;  %v5326_v6 = vpop.permute.xlu1 %1345 }
 0x3c2   : > { %2858 = vst [vmem:[%s5131_s7 + $0x128] sm:$0xff] %v2330_v34  ;;  %3450 = vmatprep.mubr.msk.bf16.mxu1 %vm1903_vm0, %v5844_v39  ;;  %v5858_v34 = vld [vmem:[#allocation82_spill] sm:$0xff] }
 0x3c4   : > { %v3344_v32 = vpop.f32.mrb[40].mxu1 }
 0x3c5   : > { %v2351_v11 = vadd.f32 %v3344_v32, %v5845_v27  ;;  %v2342_v59 = vpop.f32.mrb[41].mxu1 }
 0x3c6   : > { %v2343_v22 = vadd.f32 %v2342_v59, %v5846_v2  ;;  %v3345_v62 = vpop.f32.mrb[42].mxu1  ;;  %v5860_v2 = vld [vmem:[#allocation51_spill] sm:$0xff] }
 0x3c7   : > { %2863 = vst [vmem:[%s5131_s7 + $0x150] sm:$0xff] %v2351_v11  ;;  %v2354_v7 = vadd.f32 %v3345_v62, %v5847_v60  ;;  %v2345_v15 = vpop.f32.mrb[43].mxu1  ;;  %v5859_v11 = vld [vmem:[#allocation99_spill] sm:$0xff]  ;;  %v5339_v62 = vpop.permute.xlu1 %1355 }
 0x3c8   : > { %2861 = vst [vmem:[%s5131_s7 + $0x140] sm:$0xff] %v2343_v22  ;;  %v2346_v33 = vadd.f32 %v2345_v15, %v5848_v25  ;;  %v5336_v22 = vpop.permute.xlu0 %1350  ;;  %v5862_v25 = vld [vmem:[#allocation86_spill] sm:$0xff] }
 0x3c9   : > { %2864 = vst [vmem:[%s5131_s7 + $0x158] sm:$0xff] %v2354_v7  ;;  %3451 = vmatmul.mubr.msk.bf16.gmra.mrb[148].mxu1 %vm1903_vm0, %v5849_v36  ;;  %v5861_v7 = vld [vmem:[#allocation88_spill] sm:$0xff] }
 0x3ca   : > { %2862 = vst [vmem:[%s5131_s7 + $0x148] sm:$0xff] %v2346_v33  ;;  %3454 = vmatprep.mubr.msk.bf16.mxu1 %vm1903_vm0, %v5850_v52  ;;  %v5863_v52 = vld [vmem:[#allocation90_spill] sm:$0xff] }
 0x3cc   : > { %v3348_v56 = vpop.f32.mrb[44].mxu1 }
 0x3cd   : > { %v2367_v8 = vadd.f32 %v3348_v56, %v5851_v5  ;;  %v2358_v13 = vpop.f32.mrb[45].mxu1 }
 0x3ce   : > { %v2359_v29 = vadd.f32 %v2358_v13, %v5852_v53  ;;  %v3349_v38 = vpop.f32.mrb[46].mxu1  ;;  %v5350_v53 = vpop.permute.xlu1 %1365 }
 0x3cf   : > { %2867 = vst [vmem:[%s5131_s7 + $0x170] sm:$0xff] %v2367_v8  ;;  %v2370_v44 = vadd.f32 %v3349_v38, %v5853_v40  ;;  %v2361_v57 = vpop.f32.mrb[47].mxu1  ;;  %v5345_v8 = vpop.permute.xlu0 %1360 }
 0x3d0   : > { %2865 = vst [vmem:[%s5131_s7 + $0x160] sm:$0xff] %v2359_v29  ;;  %v2362_v24 = vadd.f32 %v2361_v57, %v5854_v17 }
 0x3d1   : > { %2868 = vst [vmem:[%s5131_s7 + $0x178] sm:$0xff] %v2370_v44  ;;  %3455 = vmatmul.mubr.msk.bf16.gmra.mrb[152].mxu1 %vm1903_vm0, %v5855_v30 }
 0x3d2   : > { %2866 = vst [vmem:[%s5131_s7 + $0x168] sm:$0xff] %v2362_v24  ;;  %3458 = vmatprep.mubr.msk.bf16.mxu1 %vm1903_vm0, %v5856_v50  ;;  %v5864_v24 = vld [vmem:[#allocation94_spill] sm:$0xff]  ;;  %v5359_v50 = vpop.permute.xlu1 %1375 }
 0x3d3   : > { %v5354_v44 = vpop.permute.xlu0 %1370 }
 0x3d4   : > { %v3352_v49 = vpop.f32.mrb[48].mxu1 }
 0x3d5   : > { %v2383_v37 = vadd.f32 %v3352_v49, %v5857_v4  ;;  %v2374_v47 = vpop.f32.mrb[49].mxu1  ;;  %v5865_v49 = vld [vmem:[#allocation92_spill] sm:$0xff] }
 0x3d6   : > { %v2375_v43 = vadd.f32 %v2374_v47, %v5858_v34  ;;  %v3353_v39 = vpop.f32.mrb[50].mxu1  ;;  %v5368_v34 = vpop.permute.xlu1 %1385 }
 0x3d7   : > { %2871 = vst [vmem:[%s5131_s7 + $0x190] sm:$0xff] %v2383_v37  ;;  %v2386_v32 = vadd.f32 %v3353_v39, %v5010_v9  ;;  %v2377_v27 = vpop.f32.mrb[51].mxu1 }
 0x3d8   : > { %2869 = vst [vmem:[%s5131_s7 + $0x180] sm:$0xff] %v2375_v43  ;;  %v2378_v59 = vadd.f32 %v2377_v27, %v5859_v11 }
 0x3d9   : > { %2872 = vst [vmem:[%s5131_s7 + $0x198] sm:$0xff] %v2386_v32  ;;  %3459 = vmatmul.mubr.msk.bf16.gmra.mrb[156].mxu1 %vm1903_vm0, %v5860_v2  ;;  %v5866_v32 = vld [vmem:[#allocation98_spill] sm:$0xff] }
 0x3da   : > { %2870 = vst [vmem:[%s5131_s7 + $0x188] sm:$0xff] %v2378_v59  ;;  %v5867_v59 = vld [vmem:[#allocation96_spill] sm:$0xff] }
 0x3dc   : > { %v3356_v60 = vpop.f32.mrb[52].mxu1 }
 0x3dd   : > { %v2399_v15 = vadd.f32 %v3356_v60, %v5861_v7  ;;  %v2390_v9 = vpop.f32.mrb[53].mxu1 }
 0x3de   : > { %v2391_v33 = vadd.f32 %v2390_v9, %v5862_v25  ;;  %v3357_v36 = vpop.f32.mrb[54].mxu1 }
 0x3df   : > { %2875 = vst [vmem:[%s5131_s7 + $0x1b0] sm:$0xff] %v2399_v15  ;;  %v2402_v56 = vadd.f32 %v3357_v36, %v5863_v52  ;;  %v2393_v5 = vpop.f32.mrb[55].mxu1 }
 0x3e0   : > { %2873 = vst [vmem:[%s5131_s7 + $0x1a0] sm:$0xff] %v2391_v33  ;;  %v2394_v13 = vadd.f32 %v2393_v5, %v5017_v48 }
 0x3e1   : > { %2876 = vst [vmem:[%s5131_s7 + $0x1b8] sm:$0xff] %v2402_v56  ;;  %v5868_v56 = vld [vmem:[#allocation100_spill] sm:$0xff] }
 0x3e2   : > { %2874 = vst [vmem:[%s5131_s7 + $0x1a8] sm:$0xff] %v2394_v13 }
 0x3e4   : > { %v3360_v29 = vpop.f32.mrb[56].mxu1 }
 0x3e5   : > { %v2415_v38 = vadd.f32 %v3360_v29, %v5185_v54  ;;  %v2406_v40 = vpop.f32.mrb[57].mxu1  ;;  %v5365_v54 = vpop.permute.xlu0 %1380 }
 0x3e6   : > { %v2407_v57 = vadd.f32 %v2406_v40, %v5170_v31  ;;  %v3361_v17 = vpop.f32.mrb[58].mxu1 }
 0x3e7   : > { %2879 = vst [vmem:[%s5131_s7 + $0x1d0] sm:$0xff] %v2415_v38  ;;  %v2418_v30 = vadd.f32 %v3361_v17, %v5864_v24  ;;  %v2409_v48 = vpop.f32.mrb[59].mxu1 }
 0x3e8   : > { %2877 = vst [vmem:[%s5131_s7 + $0x1c0] sm:$0xff] %v2407_v57  ;;  %v2410_v4 = vadd.f32 %v2409_v48, %v5865_v49 }
 0x3e9   : > { %2880 = vst [vmem:[%s5131_s7 + $0x1d8] sm:$0xff] %v2418_v30  ;;  %v5376_v60 = vpop.permute.xlu0 %1390 }
 0x3ea   : > { %2878 = vst [vmem:[%s5131_s7 + $0x1c8] sm:$0xff] %v2410_v4 }
 0x3ec   : > { %v3364_v37 = vpop.f32.mrb[60].mxu1 }
 0x3ed   : > { %v2431_v31 = vadd.f32 %v3364_v37, %v5209_v51  ;;  %v2422_v47 = vpop.f32.mrb[61].mxu1  ;;  %v5379_v51 = vpop.permute.xlu1 %1395 }
 0x3ee   : > { %v2423_v43 = vadd.f32 %v2422_v47, %v5198_v61  ;;  %v3365_v39 = vpop.f32.mrb[62].mxu1  ;;  %v5385_v52 = vpop.permute.xlu0 %1400 }
 0x3ef   : > { %2883 = vst [vmem:[%s5131_s7 + $0x1f0] sm:$0xff] %v2431_v31  ;;  %v2434_v27 = vadd.f32 %v3365_v39, %v5866_v32  ;;  %v2425_v11 = vpop.f32.mrb[63].mxu1 }
 0x3f0   : > { %2881 = vst [vmem:[%s5131_s7 + $0x1e0] sm:$0xff] %v2423_v43  ;;  %v2426_v2 = vadd.f32 %v2425_v11, %v5867_v59 }
 0x3f1   : > { %2884 = vst [vmem:[%s5131_s7 + $0x1f8] sm:$0xff] %v2434_v27  ;;  %v5390_v13 = vpop.permute.xlu1 %1405 }
 0x3f2   : > { %2882 = vst [vmem:[%s5131_s7 + $0x1e8] sm:$0xff] %v2426_v2  ;;  %v5394_v38 = vpop.permute.xlu0 %1410 }
 0x3f4   : > { %v3368_v7 = vpop.f32.mrb[64].mxu1 }
 0x3f5   : > { %v2447_v61 = vadd.f32 %v3368_v7, %v5012_v19  ;;  %v2438_v15 = vpop.f32.mrb[65].mxu1  ;;  %v5399_v24 = vpop.permute.xlu1 %1415 }
 0x3f6   : > { %v2439_v9 = vadd.f32 %v2438_v15, %v5222_v12  ;;  %v3369_v25 = vpop.f32.mrb[66].mxu1 }
 0x3f7   : > { %2887 = vst [vmem:[%s5131_s7 + $0x210] sm:$0xff] %v2447_v61  ;;  %v2450_v33 = vadd.f32 %v3369_v25, %v5167_v1  ;;  %v2441_v36 = vpop.f32.mrb[67].mxu1 }
 0x3f8   : > { %2885 = vst [vmem:[%s5131_s7 + $0x200] sm:$0xff] %v2439_v9  ;;  %v2442_v5 = vadd.f32 %v2441_v36, %v5868_v56 }
 0x3f9   : > { %2888 = vst [vmem:[%s5131_s7 + $0x218] sm:$0xff] %v2450_v33  ;;  %v5408_v4 = vpop.permute.xlu1 %1425 }
 0x3fa   : > { %2886 = vst [vmem:[%s5131_s7 + $0x208] sm:$0xff] %v2442_v5 }
 0x3fc   : > { %v3372_v19 = vpop.f32.mrb[68].mxu1 }
 0x3fd   : > { %v2463_v12 = vadd.f32 %v3372_v19, %v5204_v23  ;;  %v2454_v29 = vpop.f32.mrb[69].mxu1  ;;  %v5405_v23 = vpop.permute.xlu0 %1420 }
 0x3fe   : > { %v2455_v1 = vadd.f32 %v2454_v29, %v5180_v16  ;;  %v3373_v40 = vpop.f32.mrb[70].mxu1 }
 0x3ff   : > { %2891 = vst [vmem:[%s5131_s7 + $0x230] sm:$0xff] %v2463_v12  ;;  %v2466_v57 = vadd.f32 %v3373_v40, %v5219_v18  ;;  %v2457_v17 = vpop.f32.mrb[71].mxu1 }
 0x400   : > { %2889 = vst [vmem:[%s5131_s7 + $0x220] sm:$0xff] %v2455_v1  ;;  %v2458_v30 = vadd.f32 %v2457_v17, %v5191_v41 }
 0x401   : > { %2892 = vst [vmem:[%s5131_s7 + $0x238] sm:$0xff] %v2466_v57  ;;  %v5416_v43 = vpop.permute.xlu0 %1430 }
 0x402   : > { %2890 = vst [vmem:[%s5131_s7 + $0x228] sm:$0xff] %v2458_v30 }
 0x404   : > { %v3376_v48 = vpop.f32.mrb[72].mxu1 }
 0x405   : > { %v2479_v16 = vadd.f32 %v3376_v48, %v5243_v10  ;;  %v2470_v49 = vpop.f32.mrb[73].mxu1  ;;  %v5419_v10 = vpop.permute.xlu1 %1435 }
 0x406   : > { %v2471_v18 = vadd.f32 %v2470_v49, %v5232_v46  ;;  %v3377_v37 = vpop.f32.mrb[74].mxu1  ;;  %v5425_v59 = vpop.permute.xlu0 %1440 }
 0x407   : > { %2895 = vst [vmem:[%s5131_s7 + $0x250] sm:$0xff] %v2479_v16  ;;  %v2482_v31 = vadd.f32 %v3377_v37, %v5250_v28  ;;  %v2473_v47 = vpop.f32.mrb[75].mxu1 }
 0x408   : > { %2893 = vst [vmem:[%s5131_s7 + $0x240] sm:$0xff] %v2471_v18  ;;  %v2474_v41 = vadd.f32 %v2473_v47, %v5237_v14 }
 0x409   : > { %2896 = vst [vmem:[%s5131_s7 + $0x258] sm:$0xff] %v2482_v31  ;;  %v5430_v7 = vpop.permute.xlu1 %1445 }
 0x40a   : > { %2894 = vst [vmem:[%s5131_s7 + $0x248] sm:$0xff] %v2474_v41  ;;  %v5434_v15 = vpop.permute.xlu0 %1450 }
 0x40c   : > { %v3380_v39 = vpop.f32.mrb[76].mxu1 }
 0x40d   : > { %v2495_v46 = vadd.f32 %v3380_v39, %v5271_v0  ;;  %v2486_v32 = vpop.f32.mrb[77].mxu1  ;;  %v5439_v33 = vpop.permute.xlu1 %1455 }
 0x40e   : > { %v2487_v27 = vadd.f32 %v2486_v32, %v5256_v63  ;;  %v3381_v28 = vpop.f32.mrb[78].mxu1 }
 0x40f   : > { %2899 = vst [vmem:[%s5131_s7 + $0x270] sm:$0xff] %v2495_v46  ;;  %v2498_v11 = vadd.f32 %v3381_v28, %v5274_v42  ;;  %v2489_v14 = vpop.f32.mrb[79].mxu1 }
 0x410   : > { %2897 = vst [vmem:[%s5131_s7 + $0x260] sm:$0xff] %v2487_v27  ;;  %v2490_v2 = vadd.f32 %v2489_v14, %v5261_v35 }
 0x411   : > { %2900 = vst [vmem:[%s5131_s7 + $0x278] sm:$0xff] %v2498_v11  ;;  %v5448_v19 = vpop.permute.xlu1 %1465 }
 0x412   : > { %2898 = vst [vmem:[%s5131_s7 + $0x268] sm:$0xff] %v2490_v2 }
 0x414   : > { %v3384_v0 = vpop.f32.mrb[80].mxu1 }
 0x415   : > { %v2511_v63 = vadd.f32 %v3384_v0, %v5295_v20  ;;  %v2502_v61 = vpop.f32.mrb[81].mxu1  ;;  %v5445_v20 = vpop.permute.xlu0 %1460 }
 0x416   : > { %v2503_v42 = vadd.f32 %v2502_v61, %v5284_v58  ;;  %v3385_v9 = vpop.f32.mrb[82].mxu1 }
 0x417   : > { %2903 = vst [vmem:[%s5131_s7 + $0x290] sm:$0xff] %v2511_v63  ;;  %v2514_v25 = vadd.f32 %v3385_v9, %v5302_v45  ;;  %v2505_v35 = vpop.f32.mrb[83].mxu1 }
 0x418   : > { %2901 = vst [vmem:[%s5131_s7 + $0x280] sm:$0xff] %v2503_v42  ;;  %v2506_v36 = vadd.f32 %v2505_v35, %v5289_v55 }
 0x419   : > { %2904 = vst [vmem:[%s5131_s7 + $0x298] sm:$0xff] %v2514_v25  ;;  %v5456_v40 = vpop.permute.xlu0 %1470 }
 0x41a   : > { %2902 = vst [vmem:[%s5131_s7 + $0x288] sm:$0xff] %v2506_v36 }
 0x41c   : > { %v3388_v56 = vpop.f32.mrb[84].mxu1 }
 0x41d   : > { %v2527_v58 = vadd.f32 %v3388_v56, %v5323_v26  ;;  %v2518_v5 = vpop.f32.mrb[85].mxu1  ;;  %v5459_v26 = vpop.permute.xlu1 %1475 }
 0x41e   : > { %v2519_v45 = vadd.f32 %v2518_v5, %v5308_v21  ;;  %v3389_v12 = vpop.f32.mrb[86].mxu1  ;;  %v5465_v16 = vpop.permute.xlu0 %1480 }
 0x41f   : > { %2907 = vst [vmem:[%s5131_s7 + $0x2b0] sm:$0xff] %v2527_v58  ;;  %v2530_v29 = vadd.f32 %v3389_v12, %v5326_v6  ;;  %v2521_v1 = vpop.f32.mrb[87].mxu1 }
 0x420   : > { %2905 = vst [vmem:[%s5131_s7 + $0x2a0] sm:$0xff] %v2519_v45  ;;  %v2522_v55 = vadd.f32 %v2521_v1, %v5313_v3 }
 0x421   : > { %2908 = vst [vmem:[%s5131_s7 + $0x2b8] sm:$0xff] %v2530_v29  ;;  %v5470_v18 = vpop.permute.xlu1 %1485 }
 0x422   : > { %2906 = vst [vmem:[%s5131_s7 + $0x2a8] sm:$0xff] %v2522_v55  ;;  %v5474_v31 = vpop.permute.xlu0 %1490 }
 0x424   : > { %v3392_v57 = vpop.f32.mrb[88].mxu1 }
 0x425   : > { %v2543_v21 = vadd.f32 %v3392_v57, %v5345_v8  ;;  %v2534_v17 = vpop.f32.mrb[89].mxu1  ;;  %v5479_v39 = vpop.permute.xlu1 %1495 }
 0x426   : > { %v2535_v30 = vadd.f32 %v2534_v17, %v5336_v22  ;;  %v3393_v6 = vpop.f32.mrb[90].mxu1 }
 0x427   : > { %2911 = vst [vmem:[%s5131_s7 + $0x2d0] sm:$0xff] %v2543_v21  ;;  %v2546_v48 = vadd.f32 %v3393_v6, %v5350_v53  ;;  %v2537_v3 = vpop.f32.mrb[91].mxu1 }
 0x428   : > { %2909 = vst [vmem:[%s5131_s7 + $0x2c0] sm:$0xff] %v2535_v30  ;;  %v2538_v49 = vadd.f32 %v2537_v3, %v5339_v62 }
 0x429   : > { %2912 = vst [vmem:[%s5131_s7 + $0x2d8] sm:$0xff] %v2546_v48  ;;  %v5488_v28 = vpop.permute.xlu1 %1505 }
 0x42a   : > { %2910 = vst [vmem:[%s5131_s7 + $0x2c8] sm:$0xff] %v2538_v49 }
 0x42c   : > { %v3396_v8 = vpop.f32.mrb[92].mxu1 }
 0x42d   : > { %v2559_v22 = vadd.f32 %v3396_v8, %v5365_v54  ;;  %v2550_v37 = vpop.f32.mrb[93].mxu1  ;;  %v5485_v54 = vpop.permute.xlu0 %1500 }
 0x42e   : > { %v2551_v53 = vadd.f32 %v2550_v37, %v5354_v44  ;;  %v3397_v47 = vpop.f32.mrb[94].mxu1 }
 0x42f   : > { %2915 = vst [vmem:[%s5131_s7 + $0x2f0] sm:$0xff] %v2559_v22  ;;  %v2562_v41 = vadd.f32 %v3397_v47, %v5368_v34  ;;  %v2553_v62 = vpop.f32.mrb[95].mxu1 }
 0x430   : > { %2913 = vst [vmem:[%s5131_s7 + $0x2e0] sm:$0xff] %v2551_v53  ;;  %v2554_v46 = vadd.f32 %v2553_v62, %v5359_v50 }
 0x431   : > { %2916 = vst [vmem:[%s5131_s7 + $0x2f8] sm:$0xff] %v2562_v41  ;;  %v5496_v0 = vpop.permute.xlu0 %1510 }
 0x432   : > { %2914 = vst [vmem:[%s5131_s7 + $0x2e8] sm:$0xff] %v2554_v46 }
 0x434   : > { %v3400_v32 = vpop.f32.mrb[96].mxu1 }
 0x435   : > { %v2575_v44 = vadd.f32 %v3400_v32, %v5385_v52  ;;  %v2566_v27 = vpop.f32.mrb[97].mxu1  ;;  %v5499_v52 = vpop.permute.xlu1 %1515 }
 0x436   : > { %v2567_v34 = vadd.f32 %v2566_v27, %v5376_v60  ;;  %v3401_v11 = vpop.f32.mrb[98].mxu1  ;;  %v5505_v25 = vpop.permute.xlu0 %1520 }
 0x437   : > { %2919 = vst [vmem:[%s5131_s7 + $0x310] sm:$0xff] %v2575_v44  ;;  %v2578_v14 = vadd.f32 %v3401_v11, %v5390_v13  ;;  %v2569_v2 = vpop.f32.mrb[99].mxu1 }
 0x438   : > { %2917 = vst [vmem:[%s5131_s7 + $0x300] sm:$0xff] %v2567_v34  ;;  %v2570_v50 = vadd.f32 %v2569_v2, %v5379_v51 }
 0x439   : > { %2920 = vst [vmem:[%s5131_s7 + $0x318] sm:$0xff] %v2578_v14  ;;  %v5510_v36 = vpop.permute.xlu1 %1525 }
 0x43a   : > { %2918 = vst [vmem:[%s5131_s7 + $0x308] sm:$0xff] %v2570_v50  ;;  %v5514_v58 = vpop.permute.xlu0 %1530 }
 0x43c   : > { %v3404_v63 = vpop.f32.mrb[100].mxu1 }
 0x43d   : > { %v2591_v60 = vadd.f32 %v3404_v63, %v5405_v23  ;;  %v2582_v61 = vpop.f32.mrb[101].mxu1  ;;  %v5519_v12 = vpop.permute.xlu1 %1535 }
 0x43e   : > { %v2583_v42 = vadd.f32 %v2582_v61, %v5394_v38  ;;  %v3405_v13 = vpop.f32.mrb[102].mxu1 }
 0x43f   : > { %2923 = vst [vmem:[%s5131_s7 + $0x330] sm:$0xff] %v2591_v60  ;;  %v2594_v9 = vadd.f32 %v3405_v13, %v5408_v4  ;;  %v2585_v51 = vpop.f32.mrb[103].mxu1 }
 0x440   : > { %2921 = vst [vmem:[%s5131_s7 + $0x320] sm:$0xff] %v2583_v42  ;;  %v2586_v35 = vadd.f32 %v2585_v51, %v5399_v24 }
 0x441   : > { %2924 = vst [vmem:[%s5131_s7 + $0x338] sm:$0xff] %v2594_v9  ;;  %v1546_v57 = vpop.permute.xlu1 %1545 }
 0x442   : > { %2922 = vst [vmem:[%s5131_s7 + $0x328] sm:$0xff] %v2586_v35 }
 0x444   : > { %v3408_v23 = vpop.f32.mrb[104].mxu1 }
 0x445   : > { %v2607_v38 = vadd.f32 %v3408_v23, %v5425_v59  ;;  %v2598_v56 = vpop.f32.mrb[105].mxu1  ;;  %v1541_v59 = vpop.permute.xlu0 %1540 }
 0x446   : > { %v2599_v4 = vadd.f32 %v2598_v56, %v5416_v43  ;;  %v3409_v5 = vpop.f32.mrb[106].mxu1 }
 0x447   : > { %2927 = vst [vmem:[%s5131_s7 + $0x350] sm:$0xff] %v2607_v38  ;;  %v2610_v45 = vadd.f32 %v3409_v5, %v5430_v7  ;;  %v2601_v24 = vpop.f32.mrb[107].mxu1 }
 0x448   : > { %2925 = vst [vmem:[%s5131_s7 + $0x340] sm:$0xff] %v2599_v4  ;;  %v2602_v29 = vadd.f32 %v2601_v24, %v5419_v10 }
 0x449   : > { %2928 = vst [vmem:[%s5131_s7 + $0x358] sm:$0xff] %v2610_v45  ;;  %v5532_v6 = vpop.permute.xlu0 %1550 }
 0x44a   : > { %2926 = vst [vmem:[%s5131_s7 + $0x348] sm:$0xff] %v2602_v29 }
 0x44c   : > { %v3412_v1 = vpop.f32.mrb[108].mxu1 }
 0x44d   : > { %v2623_v43 = vadd.f32 %v3412_v1, %v5445_v20  ;;  %v2614_v55 = vpop.f32.mrb[109].mxu1  ;;  %v5535_v20 = vpop.permute.xlu1 %1555 }
 0x44e   : > { %v2615_v21 = vadd.f32 %v2614_v55, %v5434_v15  ;;  %v3413_v7 = vpop.f32.mrb[110].mxu1  ;;  %v1561_v22 = vpop.permute.xlu0 %1560 }
 0x44f   : > { %2931 = vst [vmem:[%s5131_s7 + $0x370] sm:$0xff] %v2623_v43  ;;  %v2626_v17 = vadd.f32 %v3413_v7, %v5448_v19  ;;  %v2617_v30 = vpop.f32.mrb[111].mxu1 }
 0x450   : > { %2929 = vst [vmem:[%s5131_s7 + $0x360] sm:$0xff] %v2615_v21  ;;  %v2618_v10 = vadd.f32 %v2617_v30, %v5439_v33 }
 0x451   : > { %2932 = vst [vmem:[%s5131_s7 + $0x378] sm:$0xff] %v2626_v17  ;;  %v1566_v53 = vpop.permute.xlu1 %1565 }
 0x452   : > { %2930 = vst [vmem:[%s5131_s7 + $0x368] sm:$0xff] %v2618_v10  ;;  %v1571_v41 = vpop.permute.xlu0 %1570 }
 0x454   : > { %v3416_v48 = vpop.f32.mrb[112].mxu1 }
 0x455   : > { %v2639_v15 = vadd.f32 %v3416_v48, %v5465_v16  ;;  %v2630_v3 = vpop.f32.mrb[113].mxu1 }
 0x456   : > { %v2631_v49 = vadd.f32 %v2630_v3, %v5456_v40  ;;  %v3417_v19 = vpop.f32.mrb[114].mxu1 }
 0x457   : > { %2935 = vst [vmem:[%s5131_s7 + $0x390] sm:$0xff] %v2639_v15  ;;  %v2642_v8 = vadd.f32 %v3417_v19, %v5470_v18  ;;  %v2633_v33 = vpop.f32.mrb[115].mxu1 }
 0x458   : > { %2933 = vst [vmem:[%s5131_s7 + $0x380] sm:$0xff] %v2631_v49  ;;  %v2634_v37 = vadd.f32 %v2633_v33, %v5459_v26  ;;  %v1576_v26 = vpop.permute.xlu1 %1575 }
 0x459   : > { %2936 = vst [vmem:[%s5131_s7 + $0x398] sm:$0xff] %v2642_v8 }
 0x45a   : > { %2934 = vst [vmem:[%s5131_s7 + $0x388] sm:$0xff] %v2634_v37 }
 0x45c   : > { %v3420_v16 = vpop.f32.mrb[116].mxu1  ;;  %v1586_v11 = vpop.permute.xlu1 %1585 }
 0x45d   : > { %v2655_v47 = vadd.f32 %v3420_v16, %v5485_v54  ;;  %v2646_v40 = vpop.f32.mrb[117].mxu1  ;;  %v1581_v54 = vpop.permute.xlu0 %1580 }
 0x45e   : > { %v2647_v62 = vadd.f32 %v2646_v40, %v5474_v31  ;;  %v3421_v46 = vpop.f32.mrb[118].mxu1 }
 0x45f   : > { %2939 = vst [vmem:[%s5131_s7 + $0x3b0] sm:$0xff] %v2655_v47  ;;  %v2658_v18 = vadd.f32 %v3421_v46, %v5488_v28  ;;  %v2649_v32 = vpop.f32.mrb[119].mxu1 }
 0x460   : > { %2937 = vst [vmem:[%s5131_s7 + $0x3a0] sm:$0xff] %v2647_v62  ;;  %v2650_v44 = vadd.f32 %v2649_v32, %v5479_v39  ;;  %v1596_v60 = vpop.permute.xlu1 %1595 }
 0x461   : > { %2940 = vst [vmem:[%s5131_s7 + $0x3b8] sm:$0xff] %v2658_v18  ;;  %v1591_v63 = vpop.permute.xlu0 %1590 }
 0x462   : > { %2938 = vst [vmem:[%s5131_s7 + $0x3a8] sm:$0xff] %v2650_v44 }
 0x464   : > { %v3424_v27 = vpop.f32.mrb[120].mxu1 }
 0x465   : > { %v2671_v34 = vadd.f32 %v3424_v27, %v5505_v25  ;;  %v2662_v31 = vpop.f32.mrb[121].mxu1  ;;  %v1601_v35 = vpop.permute.xlu0 %1600 }
 0x466   : > { %v2663_v14 = vadd.f32 %v2662_v31, %v5496_v0  ;;  %v3425_v28 = vpop.f32.mrb[122].mxu1 }
 0x467   : > { %2943 = vst [vmem:[%s5131_s7 + $0x3d0] sm:$0xff] %v2671_v34  ;;  %v2674_v2 = vadd.f32 %v3425_v28, %v5510_v36  ;;  %v2665_v50 = vpop.f32.mrb[123].mxu1  ;;  %v1606_v36 = vpop.permute.xlu1 %1605 }
 0x468   : > { %2941 = vst [vmem:[%s5131_s7 + $0x3c0] sm:$0xff] %v2663_v14  ;;  %v2666_v39 = vadd.f32 %v2665_v50, %v5499_v52 }
 0x469   : > { %2944 = vst [vmem:[%s5131_s7 + $0x3d8] sm:$0xff] %v2674_v2  ;;  %v1611_v4 = vpop.permute.xlu0 %1610 }
 0x46a   : > { %2942 = vst [vmem:[%s5131_s7 + $0x3c8] sm:$0xff] %v2666_v39 }
 0x46b   : > { %v1616_v29 = vpop.permute.xlu1 %1615 }
 0x46c   : > { %v3428_v61 = vpop.f32.mrb[124].mxu1 }
 0x46d   : > { %v2687_v42 = vadd.f32 %v3428_v61, %v1541_v59  ;;  %v2678_v13 = vpop.f32.mrb[125].mxu1  ;;  %v1621_v59 = vpop.permute.xlu0 %1620 }
 0x46e   : > { %v2679_v0 = vadd.f32 %v2678_v13, %v5514_v58  ;;  %v3429_v9 = vpop.f32.mrb[126].mxu1 }
 0x46f   : > { %2947 = vst [vmem:[%s5131_s7 + $0x3f0] sm:$0xff] %v2687_v42  ;;  %v2690_v51 = vadd.f32 %v3429_v9, %v1546_v57  ;;  %v2681_v25 = vpop.f32.mrb[127].mxu1  ;;  %v1626_v57 = vpop.permute.xlu1 %1625 }
 0x470   : > { %2945 = vst [vmem:[%s5131_s7 + $0x3e0] sm:$0xff] %v2679_v0  ;;  %v2682_v52 = vadd.f32 %v2681_v25, %v5519_v12 }
 0x471   : > { %2948 = vst [vmem:[%s5131_s7 + $0x3f8] sm:$0xff] %v2690_v51 }
 0x472   : > { %2946 = vst [vmem:[%s5131_s7 + $0x3e8] sm:$0xff] %v2682_v52 }
 0x474   : > { %v3432_v23 = vpop.f32.mrb[128].mxu1 }
 0x475   : > { %v2703_v38 = vadd.f32 %v3432_v23, %v1561_v22  ;;  %v2694_v56 = vpop.f32.mrb[129].mxu1 }
 0x476   : > { %v2695_v58 = vadd.f32 %v2694_v56, %v5532_v6  ;;  %v3433_v5 = vpop.f32.mrb[130].mxu1  ;;  %v1631_v6 = vpop.permute.xlu0 %1630 }
 0x477   : > { %2951 = vst [vmem:[%s5131_s7 + $0x410] sm:$0xff] %v2703_v38  ;;  %v2706_v45 = vadd.f32 %v3433_v5, %v1566_v53  ;;  %v2697_v24 = vpop.f32.mrb[131].mxu1 }
 0x478   : > { %2949 = vst [vmem:[%s5131_s7 + $0x400] sm:$0xff] %v2695_v58  ;;  %v2698_v12 = vadd.f32 %v2697_v24, %v5535_v20  ;;  %v1636_v20 = vpop.permute.xlu1 %1635 }
 0x479   : > { %2952 = vst [vmem:[%s5131_s7 + $0x418] sm:$0xff] %v2706_v45 }
 0x47a   : > { %2950 = vst [vmem:[%s5131_s7 + $0x408] sm:$0xff] %v2698_v12  ;;  %v1641_v22 = vpop.permute.xlu0 %1640 }
 0x47c   : > { %v3436_v1 = vpop.f32.mrb[132].mxu1  ;;  %v1646_v53 = vpop.permute.xlu1 %1645 }
 0x47d   : > { %v2719_v43 = vadd.f32 %v3436_v1, %v1581_v54  ;;  %v2710_v55 = vpop.f32.mrb[133].mxu1 }
 0x47e   : > { %v2711_v21 = vadd.f32 %v2710_v55, %v1571_v41  ;;  %v3437_v7 = vpop.f32.mrb[134].mxu1  ;;  %v1651_v41 = vpop.permute.xlu0 %1650 }
 0x47f   : > { %2955 = vst [vmem:[%s5131_s7 + $0x430] sm:$0xff] %v2719_v43  ;;  %v2722_v17 = vadd.f32 %v3437_v7, %v1586_v11  ;;  %v2713_v30 = vpop.f32.mrb[135].mxu1 }
 0x480   : > { %2953 = vst [vmem:[%s5131_s7 + $0x420] sm:$0xff] %v2711_v21  ;;  %v2714_v10 = vadd.f32 %v2713_v30, %v1576_v26  ;;  %v1656_v26 = vpop.permute.xlu1 %1655 }
 0x481   : > { %2956 = vst [vmem:[%s5131_s7 + $0x438] sm:$0xff] %v2722_v17 }
 0x482   : > { %2954 = vst [vmem:[%s5131_s7 + $0x428] sm:$0xff] %v2714_v10  ;;  %v1661_v54 = vpop.permute.xlu0 %1660 }
 0x484   : > { %v3440_v48 = vpop.f32.mrb[136].mxu1  ;;  %v1666_v11 = vpop.permute.xlu1 %1665 }
 0x485   : > { %v2735_v15 = vadd.f32 %v3440_v48, %v1601_v35  ;;  %v2726_v3 = vpop.f32.mrb[137].mxu1 }
 0x486   : > { %v2727_v49 = vadd.f32 %v2726_v3, %v1591_v63  ;;  %v3441_v19 = vpop.f32.mrb[138].mxu1  ;;  %v1671_v63 = vpop.permute.xlu0 %1670 }
 0x487   : > { %2959 = vst [vmem:[%s5131_s7 + $0x450] sm:$0xff] %v2735_v15  ;;  %v2738_v8 = vadd.f32 %v3441_v19, %v1606_v36  ;;  %v2729_v33 = vpop.f32.mrb[139].mxu1 }
 0x488   : > { %2957 = vst [vmem:[%s5131_s7 + $0x440] sm:$0xff] %v2727_v49  ;;  %v2730_v37 = vadd.f32 %v2729_v33, %v1596_v60  ;;  %v1676_v60 = vpop.permute.xlu1 %1675 }
 0x489   : > { %2960 = vst [vmem:[%s5131_s7 + $0x458] sm:$0xff] %v2738_v8 }
 0x48a   : > { %2958 = vst [vmem:[%s5131_s7 + $0x448] sm:$0xff] %v2730_v37  ;;  %v1681_v35 = vpop.permute.xlu0 %1680 }
 0x48c   : > { %v3444_v16 = vpop.f32.mrb[140].mxu1  ;;  %v1686_v36 = vpop.permute.xlu1 %1685 }
 0x48d   : > { %v2751_v47 = vadd.f32 %v3444_v16, %v1621_v59  ;;  %v2742_v40 = vpop.f32.mrb[141].mxu1 }
 0x48e   : > { %v2743_v62 = vadd.f32 %v2742_v40, %v1611_v4  ;;  %v3445_v46 = vpop.f32.mrb[142].mxu1  ;;  %v1691_v4 = vpop.permute.xlu0 %1690 }
 0x48f   : > { %2963 = vst [vmem:[%s5131_s7 + $0x470] sm:$0xff] %v2751_v47  ;;  %v2754_v18 = vadd.f32 %v3445_v46, %v1626_v57  ;;  %v2745_v32 = vpop.f32.mrb[143].mxu1 }
 0x490   : > { %2961 = vst [vmem:[%s5131_s7 + $0x460] sm:$0xff] %v2743_v62  ;;  %v2746_v44 = vadd.f32 %v2745_v32, %v1616_v29  ;;  %v1696_v29 = vpop.permute.xlu1 %1695 }
 0x491   : > { %2964 = vst [vmem:[%s5131_s7 + $0x478] sm:$0xff] %v2754_v18 }
 0x492   : > { %2962 = vst [vmem:[%s5131_s7 + $0x468] sm:$0xff] %v2746_v44  ;;  %v1701_v59 = vpop.permute.xlu0 %1700 }
 0x494   : > { %v3448_v27 = vpop.f32.mrb[144].mxu1  ;;  %v1706_v57 = vpop.permute.xlu1 %1705 }
 0x495   : > { %v2767_v34 = vadd.f32 %v3448_v27, %v1641_v22  ;;  %v2758_v31 = vpop.f32.mrb[145].mxu1 }
 0x496   : > { %v2759_v14 = vadd.f32 %v2758_v31, %v1631_v6  ;;  %v3449_v28 = vpop.f32.mrb[146].mxu1 }
 0x497   : > { %2967 = vst [vmem:[%s5131_s7 + $0x490] sm:$0xff] %v2767_v34  ;;  %v2770_v2 = vadd.f32 %v3449_v28, %v1646_v53  ;;  %v2761_v50 = vpop.f32.mrb[147].mxu1 }
 0x498   : > { %2965 = vst [vmem:[%s5131_s7 + $0x480] sm:$0xff] %v2759_v14  ;;  %v2762_v39 = vadd.f32 %v2761_v50, %v1636_v20 }
 0x499   : > { %2968 = vst [vmem:[%s5131_s7 + $0x498] sm:$0xff] %v2770_v2 }
 0x49a   : > { %2966 = vst [vmem:[%s5131_s7 + $0x488] sm:$0xff] %v2762_v39 }
 0x49c   : > { %v3452_v61 = vpop.f32.mrb[148].mxu1 }
 0x49d   : > { %v2783_v42 = vadd.f32 %v3452_v61, %v1661_v54  ;;  %v2774_v13 = vpop.f32.mrb[149].mxu1 }
 0x49e   : > { %v2775_v0 = vadd.f32 %v2774_v13, %v1651_v41  ;;  %v3453_v9 = vpop.f32.mrb[150].mxu1 }
 0x49f   : > { %2971 = vst [vmem:[%s5131_s7 + $0x4b0] sm:$0xff] %v2783_v42  ;;  %v2786_v51 = vadd.f32 %v3453_v9, %v1666_v11  ;;  %v2777_v25 = vpop.f32.mrb[151].mxu1 }
 0x4a0   : > { %2969 = vst [vmem:[%s5131_s7 + $0x4a0] sm:$0xff] %v2775_v0  ;;  %v2778_v52 = vadd.f32 %v2777_v25, %v1656_v26 }
 0x4a1   : > { %2972 = vst [vmem:[%s5131_s7 + $0x4b8] sm:$0xff] %v2786_v51 }
 0x4a2   : > { %2970 = vst [vmem:[%s5131_s7 + $0x4a8] sm:$0xff] %v2778_v52 }
 0x4a4   : > { %v3456_v23 = vpop.f32.mrb[152].mxu1 }
 0x4a5   : > { %v2799_v38 = vadd.f32 %v3456_v23, %v1681_v35  ;;  %v2790_v56 = vpop.f32.mrb[153].mxu1 }
 0x4a6   : > { %v2791_v58 = vadd.f32 %v2790_v56, %v1671_v63  ;;  %v3457_v5 = vpop.f32.mrb[154].mxu1 }
 0x4a7   : > { %2975 = vst [vmem:[%s5131_s7 + $0x4d0] sm:$0xff] %v2799_v38  ;;  %v2802_v45 = vadd.f32 %v3457_v5, %v1686_v36  ;;  %v2793_v24 = vpop.f32.mrb[155].mxu1 }
 0x4a8   : > { %2973 = vst [vmem:[%s5131_s7 + $0x4c0] sm:$0xff] %v2791_v58  ;;  %v2794_v12 = vadd.f32 %v2793_v24, %v1676_v60 }
 0x4a9   : > { %2976 = vst [vmem:[%s5131_s7 + $0x4d8] sm:$0xff] %v2802_v45 }
 0x4aa   : > { %2974 = vst [vmem:[%s5131_s7 + $0x4c8] sm:$0xff] %v2794_v12 }
 0x4ac   : > { %v3460_v1 = vpop.f32.mrb[156].mxu1 }
 0x4ad   : > { %v2815_v43 = vadd.f32 %v3460_v1, %v1701_v59  ;;  %v2806_v55 = vpop.f32.mrb[157].mxu1 }
 0x4ae   : > { %v2807_v21 = vadd.f32 %v2806_v55, %v1691_v4  ;;  %v3461_v7 = vpop.f32.mrb[158].mxu1 }
 0x4af   : > { %2979 = vst [vmem:[%s5131_s7 + $0x4f0] sm:$0xff] %v2815_v43  ;;  %v2818_v17 = vadd.f32 %v3461_v7, %v1706_v57  ;;  %v2809_v30 = vpop.f32.mrb[159].mxu1 }
 0x4b0   : > { %2977 = vst [vmem:[%s5131_s7 + $0x4e0] sm:$0xff] %v2807_v21  ;;  %v2810_v10 = vadd.f32 %v2809_v30, %v1696_v29 }
 0x4b1   : > { %2980 = vst [vmem:[%s5131_s7 + $0x4f8] sm:$0xff] %v2818_v17 }
 0x4b2   : > { %2978 = vst [vmem:[%s5131_s7 + $0x4e8] sm:$0xff] %v2810_v10 }
 0x4b3   : > { %3710 = shalt.err (!%p3707_p3)
}
 0x4b4   : > { %s3711_s28 = scalar_lea.hbm %s5603_s18, 20480  ;;  %s3715_s8 = scalar_lea.hbm %s5667_s4, 81920 }
 0x4b5   : > { %p3712_p12 = scmp.ne.s32.totalorder %s5603_s18, %s3711_s28  ;;  %p3716_p8 = scmp.lt.u32.totalorder %s5603_s18, %s5667_s4 }
 0x4b6   : > { %p3717_p1 = scmp.lt.u32.totalorder %s3715_s8, %s3711_s28  ;;  %p3719_p10 = scmp.lt.u32.totalorder %s3711_s28, %s5603_s18 }
 0x4b7   : > { %p3713_p4 = pnand %p3712_p12, %p5869_p11 }
 0x4b8   : > { %p3718_p7 = por %p3717_p1, %p3716_p8 }
 0x4b9   : > { %p3714_p6 = pneg %p3713_p4 }
 0x4ba   : > { %p3720_p13 = por %p3719_p10, %p3718_p7 }
 0x4bc   : > { %p3721_p0 = pnand %p3720_p13, %p3714_p6 }
 0x4be   : > { %3724 = shalt.err (!%p3721_p0)
}
 0x4bf   : > { %s3808_s7 = smov 128   ;;  %s3809_s30 = smov 256  }
 0x4c0   : > { %s3810_s1 = smov 8  }
 0x4c1   : > { %3494 = dma.vmem_to_hbm [thread:$0]  (%p5869_p11), %s5606_s19, 20480, %s5603_s18, %s2982_s24, %s3808_s7, %s3809_s30, %s3810_s1  }
 0x4c2 PF: > { %s5870_s23 = sld [smem:[#allocation13_spill]]  ;;  %p3516_p5 = scmp.ge.s32.totalorder %s3799_s22, 2 }
 0x4c3   : > { %s3011_s25 = sand.u32 1, %s3771_s15  }
 0x4c4   : > { %s3012_s12 = scalar_lea.sflag [#allocation4], %s3011_s25 }
 0x4c8   : > { %p5871_p9 = scmp.ne.s32.totalorder %s5870_s23, 0 }
 0x4ca   : > { %p3508_p2 = pnand %p3516_p5, %p5871_p9 }
 0x4cc   : > { %3766 = dma.done.wait (!%p3508_p2), %s3012_s12, 20480  }
 0x4cd   : > { %3768 = vsyncadd (!%p3508_p2), %s3012_s12, 4294946816  ;;  %s21_s22 = sadd.s32 1, %s3799_s22   ;;  %s5872_s18 = sld [smem:[#allocation12_spill]] }
 0x4ce   : > { %p18_p3 = scmp.ge.s32.totalorder %s21_s22, 6   ;;  %s5873_s20 = sld [smem:[#allocation14_spill]] }
 0x4cf   : > { %s5874_s15 = smov %s3775_s16  ;;  %s5875_s16 = smov %s3779_s17 }
 0x4d0   : > { %s5876_s17 = smov %s4000_s9  ;;  %s5877_s19 = smov %s3795_s21 }
 0x4d1   : > { %s5878_s21 = smov %s5884_s14  ;;  %20 = sbr.rel (!%p18_p3) target bundleno = 11 (0xb), region = 89 }
 0x4d8   :  { %3017 = vsyncpa [#allocation3], 1 }
 0x4d9   :  { %3019 = vsyncpa [#allocation3 + $0x1], 1 }
 0x4da   :  { %3020 = vsyncpa [#allocation6], 1 }
 0x4db   :  { %3021 = vsyncpa [#allocation4], 1 }
 0x4dc   :  { %3023 = vsyncpa [#allocation4 + $0x1], 1 }

</bundles_post_ra>
